<compile_context>
chip_gen: v7x
topology: tpu7x:2x2x1
jax: 0.10.0
libtpu: 0.0.40
codegen_flags: <defaults>
</compile_context>

<pallas_src>
import jax
import jax.numpy as jnp
import numpy as np
from jax.experimental import pallas as pl
from jax.experimental.pallas import tpu as pltpu

H = 16
W = 16
HW = H * W          # 256 -> per-image lane span inside the kernel
C_IN = 32           # feat_mask channels
C_MID = 16          # feat_struct / intermediate / output channels
BN_EPS = 1e-5


# ----------------------------- Pallas kernel ------------------------------ #
def msa_kernel(fm_ref, fs_ref,
               w14_ref, b14_ref,
               w2_ref, b2_ref,
               w3_ref, b3_ref,
               w5_ref, b5_ref,
               out_ref):
    L = fm_ref.shape[1]                      # bt * HW lanes in this tile

    # Per-image-periodic tap validity masks (built once per grid step, shared
    # by all three 3x3 convs).  `pos = lane % HW` makes the boundary pattern
    # repeat across the bt images packed on the lane axis, so the full-width
    # roll cannot leak data between adjacent images.
    lane = jax.lax.broadcasted_iota(jnp.int32, (C_MID, L), 1)
    pos = lane % HW
    col = pos % W
    tap_masks = []
    for k in range(9):
        dy, dx = k // 3 - 1, k % 3 - 1
        s = dy * W + dx
        col_ok = jnp.logical_and(col + dx >= 0, col + dx < W)
        row_ok = jnp.logical_and(pos + s >= 0, pos + s < HW)
        tap_masks.append(jnp.logical_and(col_ok, row_ok))

    def conv3x3(x, w):
        """3x3 stride-1 'same' conv for all bt images as one im2col matmul."""
        taps = []
        for k in range(9):
            dy, dx = k // 3 - 1, k % 3 - 1
            s = dy * W + dx
            if s == 0:
                taps.append(x)
            else:
                shifted = pltpu.roll(x, (-s) % L, 1)   # shifted[:, p] == x[:, p+s]
                taps.append(jnp.where(tap_masks[k], shifted, 0.0))
        xt = jnp.concatenate(taps, axis=0)             # (144, L) im2col block
        return jnp.dot(w, xt, preferred_element_type=jnp.float32)

    fm = fm_ref[...]                                   # (32, L)
    fs = fs_ref[...]                                   # (16, L)

    # conv4(+bn4) and the conv1 gate logit in ONE matmul:
    # rows 0..15 -> y, row 16 -> gate logit.
    ya = jnp.dot(w14_ref[...], fm, preferred_element_type=jnp.float32) + b14_ref[...]
    y = jnp.maximum(ya[:C_MID], 0.0)                   # relu(bn4(conv4(fm)))
    gate = jax.nn.sigmoid(ya[C_MID:C_MID + 1])         # sigmoid(conv1(fm)), (1, L)
    x = gate * fs

    # x = relu(bn2(conv2(x)))
    x = jnp.maximum(conv3x3(x, w2_ref[...]) + b2_ref[...], 0.0)
    # x = relu(bn3(conv3(x + feat_struct)))
    x = jnp.maximum(conv3x3(x + fs, w3_ref[...]) + b3_ref[...], 0.0)
    # out = relu(bn5(conv5(x + y)))
    out_ref[...] = jnp.maximum(conv3x3(x + y, w5_ref[...]) + b5_ref[...], 0.0)


# ------------------------------ JAX wrapper -------------------------------- #
def _const_spec(shape):
    nd = len(shape)
    return pl.BlockSpec(shape, lambda i, _nd=nd: (0,) * _nd)


def _pick_batch_tile(n):
    """Size the batch tile for ~2 balanced grid steps (one per TensorCore on
    dual-TC chips; DMA/compute overlap on single-TC chips).  Per-grid-step
    overhead (~0.35 us) is comparable to a single image's compute, so many
    tiny steps are pure overhead; the cap keeps per-step VMEM (inputs +
    im2col intermediates) well inside the default scoped limit."""
    MAX_BT = 16
    if n <= 1:
        return 1
    if n % 2 == 0 and n // 2 <= MAX_BT:
        return n // 2                          # exactly 2 balanced steps
    if n <= MAX_BT:
        return n                               # single step (small odd N)
    best_even, best_any = None, 1
    for bt in range(1, MAX_BT + 1):
        if n % bt == 0:
            best_any = bt
            if (n // bt) % 2 == 0:
                best_even = bt
    return best_even if best_even is not None else best_any


def msa_1024_pallas(feat_mask_nchw, feat_struct_nchw, kp):
    """feat_mask: (N, 32, H, W), feat_struct: (N, 16, H, W) -> (N, 16, H, W)."""
    n = feat_mask_nchw.shape[0]
    # NCHW -> channel-major, lane-batched (C, N*H*W).  One-off relayout done
    # by XLA outside the kernel; the kernel then sees lane-dense slabs.
    fm = jnp.transpose(feat_mask_nchw.reshape(n, C_IN, HW).astype(jnp.float32),
                       (1, 0, 2)).reshape(C_IN, n * HW)
    fs = jnp.transpose(feat_struct_nchw.reshape(n, C_MID, HW).astype(jnp.float32),
                       (1, 0, 2)).reshape(C_MID, n * HW)

    bt = _pick_batch_tile(n)
    grid = (n // bt,)
    L = bt * HW

    in_specs = [
        pl.BlockSpec((C_IN, L), lambda i: (0, i)),
        pl.BlockSpec((C_MID, L), lambda i: (0, i)),
        _const_spec((C_MID + 1, C_IN)), _const_spec((C_MID + 1, 1)),   # conv4+bn4 | conv1
        _const_spec((C_MID, 9 * C_MID)), _const_spec((C_MID, 1)),      # conv2 (+bn2)
        _const_spec((C_MID, 9 * C_MID)), _const_spec((C_MID, 1)),      # conv3 (+bn3)
        _const_spec((C_MID, 9 * C_MID)), _const_spec((C_MID, 1)),      # conv5 (+bn5)
    ]
    out_specs = pl.BlockSpec((C_MID, L), lambda i: (0, i))

    out = pl.pallas_call(
        msa_kernel,
        out_shape=jax.ShapeDtypeStruct((C_MID, n * HW), jnp.float32),
        grid=grid,
        in_specs=in_specs,
        out_specs=out_specs,
        compiler_params=pltpu.CompilerParams(dimension_semantics=("parallel",)),
    )(fm, fs,
      kp["w14"], kp["b14"],
      kp["w2"], kp["b2"],
      kp["w3"], kp["b3"],
      kp["w5"], kp["b5"])

    # (16, N*HW) -> NCHW.
    return jnp.transpose(out.reshape(C_MID, n, HW), (1, 0, 2)).reshape(n, C_MID, H, W)


# --------------------- deterministic parameter setup ----------------------- #
def init_torch_style_params(key):
    ks = iter(jax.random.split(key, 40))

    def u(shape, scale=0.2):
        return jax.random.uniform(next(ks), shape, jnp.float32, -scale, scale)

    p = {
        "conv1_w": u((1, C_IN, 1, 1)), "conv1_b": u((1,)),
        "conv2_w": u((C_MID, C_MID, 3, 3)), "conv2_b": u((C_MID,)),
        "conv3_w": u((C_MID, C_MID, 3, 3)), "conv3_b": u((C_MID,)),
        "conv4_w": u((C_MID, C_IN, 1, 1)), "conv4_b": u((C_MID,)),
        "conv5_w": u((C_MID, C_MID, 3, 3)), "conv5_b": u((C_MID,)),
    }
    for i in (2, 3, 4, 5):
        p[f"bn{i}_gamma"] = 1.0 + u((C_MID,), 0.1)
        p[f"bn{i}_beta"] = u((C_MID,), 0.1)
        p[f"bn{i}_mean"] = u((C_MID,), 0.1)
        p[f"bn{i}_var"] = 1.0 + u((C_MID,), 0.1)   # positive
    return p


def fold_bn(w_oihw, b, gamma, beta, mean, var):
    scale = gamma / jnp.sqrt(var + BN_EPS)
    return w_oihw * scale[:, None, None, None], (b - mean) * scale + beta


def folded_params(p):
    f = {"w1": p["conv1_w"], "b1": p["conv1_b"]}    # conv1 has no BN
    for i in (2, 3, 4, 5):
        w, b = fold_bn(p[f"conv{i}_w"], p[f"conv{i}_b"],
                       p[f"bn{i}_gamma"], p[f"bn{i}_beta"],
                       p[f"bn{i}_mean"], p[f"bn{i}_var"])
        f[f"w{i}"], f[f"b{i}"] = w, b
    return f


def kernel_params(f):
    def k1x1(w):      # OIHW (Co,Ci,1,1) -> (Co, Ci)
        return w[:, :, 0, 0]

    def k3x3(w):      # OIHW (Co,Ci,3,3) -> (Co, 9*Ci), tap-major (ky, kx, ci)
        co, ci = w.shape[0], w.shape[1]
        return jnp.transpose(w, (0, 2, 3, 1)).reshape(co, 9 * ci)

    # Stack conv1 (gate) as the 17th output row of the folded conv4 weight so
    # both run in one MXU matmul; b1 rides in the stacked bias too.
    w14 = jnp.concatenate([k1x1(f["w4"]), k1x1(f["w1"])], axis=0)        # (17, 32)
    b14 = jnp.concatenate([f["b4"], f["b1"]], axis=0).reshape(C_MID + 1, 1)

    return {
        "w14": w14, "b14": b14,
        "w2": k3x3(f["w2"]), "b2": f["b2"].reshape(C_MID, 1),
        "w3": k3x3(f["w3"]), "b3": f["b3"].reshape(C_MID, 1),
        "w5": k3x3(f["w5"]), "b5": f["b5"].reshape(C_MID, 1),
    }


# ------------------------- pure-JAX reference ------------------------------ #
def _conv_nchw(x, w, b, pad):
    y = jax.lax.conv_general_dilated(
        x, w, window_strides=(1, 1), padding=[(pad, pad), (pad, pad)],
        dimension_numbers=("NCHW", "OIHW", "NCHW"),
        precision=jax.lax.Precision.HIGHEST)
    return y + b[None, :, None, None]


def msa_reference(feat_mask, feat_struct, f):
    y = jax.nn.relu(_conv_nchw(feat_mask, f["w4"], f["b4"], 0))
    x = jax.nn.sigmoid(_conv_nchw(feat_mask, f["w1"], f["b1"], 0))
    x = x * feat_struct
    x = jax.nn.relu(_conv_nchw(x, f["w2"], f["b2"], 1))
    x = jax.nn.relu(_conv_nchw(x + feat_struct, f["w3"], f["b3"], 1))
    y = jax.nn.relu(_conv_nchw(x + y, f["w5"], f["b5"], 1))
    return y


# ---------------------------------- main ----------------------------------- #
if __name__ == "__main__":
    key = jax.random.PRNGKey(0)
    k_fm, k_fs, k_par = jax.random.split(key, 3)

    N = 2
    feat_mask = jax.random.normal(k_fm, (N, C_IN, H, W), jnp.float32)     # NCHW
    feat_struct = jax.random.normal(k_fs, (N, C_MID, H, W), jnp.float32)  # NCHW

    p = init_torch_style_params(k_par)
    f = folded_params(p)
    kp = kernel_params(f)

    out = msa_1024_pallas(feat_mask, feat_struct, kp)
    out = jax.block_until_ready(out)

    ref = jax.block_until_ready(msa_reference(feat_mask, feat_struct, f))
    assert out.shape == (N, C_MID, H, W)
    np.testing.assert_allclose(np.asarray(out), np.asarray(ref), rtol=1e-3, atol=1e-3)

    print("KERNEL_OK")
</pallas_src>

<mosaic_0001>
module attributes {stable_mosaic.version = 11 : i64} {
  func.func @msa_kernel(%arg0: i32, %arg1: memref<32x256xf32, #tpu.memory_space<vmem>>, %arg2: memref<16x256xf32, #tpu.memory_space<vmem>>, %arg3: memref<17x32xf32, #tpu.memory_space<vmem>>, %arg4: memref<17x1xf32, #tpu.memory_space<vmem>>, %arg5: memref<16x144xf32, #tpu.memory_space<vmem>>, %arg6: memref<16x1xf32, #tpu.memory_space<vmem>>, %arg7: memref<16x144xf32, #tpu.memory_space<vmem>>, %arg8: memref<16x1xf32, #tpu.memory_space<vmem>>, %arg9: memref<16x144xf32, #tpu.memory_space<vmem>>, %arg10: memref<16x1xf32, #tpu.memory_space<vmem>>, %arg11: memref<16x256xf32, #tpu.memory_space<vmem>>) attributes {dimension_semantics = [#tpu.dimension_semantics<parallel>], iteration_bounds = array<i64: 2>, scalar_prefetch = 0 : i64, scratch_operands = 0 : i64, tpu.core_type = #tpu.core_type<tc>, window_params = [{transform_indices = @transform_0, window_bounds = array<i64: 32, 256>}, {transform_indices = @transform_1, window_bounds = array<i64: 16, 256>}, {pipeline_mode = #tpu.pipeline_mode<synchronous>, transform_indices = @transform_2, window_bounds = array<i64: 17, 32>}, {pipeline_mode = #tpu.pipeline_mode<synchronous>, transform_indices = @transform_3, window_bounds = array<i64: 17, 1>}, {pipeline_mode = #tpu.pipeline_mode<synchronous>, transform_indices = @transform_4, window_bounds = array<i64: 16, 144>}, {pipeline_mode = #tpu.pipeline_mode<synchronous>, transform_indices = @transform_5, window_bounds = array<i64: 16, 1>}, {pipeline_mode = #tpu.pipeline_mode<synchronous>, transform_indices = @transform_6, window_bounds = array<i64: 16, 144>}, {pipeline_mode = #tpu.pipeline_mode<synchronous>, transform_indices = @transform_7, window_bounds = array<i64: 16, 1>}, {pipeline_mode = #tpu.pipeline_mode<synchronous>, transform_indices = @transform_8, window_bounds = array<i64: 16, 144>}, {pipeline_mode = #tpu.pipeline_mode<synchronous>, transform_indices = @transform_9, window_bounds = array<i64: 16, 1>}, {transform_indices = @transform_10, window_bounds = array<i64: 16, 256>}]} {
    %0 = tpu.iota {dimensions = array<i32: 1>} : vector<16x256xi32>
    %c256_i32 = arith.constant 256 : i32
    %c0_i32 = arith.constant 0 : i32
    %1 = arith.cmpi eq, %c256_i32, %c0_i32 : i32
    %c1_i32 = arith.constant 1 : i32
    %2 = arith.select %1, %c1_i32, %c256_i32 : i32
    %3 = vector.broadcast %2 : i32 to vector<16x256xi32>
    %4 = arith.remsi %0, %3 : vector<16x256xi32>
    %c0_i32_0 = arith.constant 0 : i32
    %5 = vector.broadcast %c0_i32_0 : i32 to vector<16x256xi32>
    %6 = arith.cmpi ne, %4, %5 : vector<16x256xi32>
    %c0_i32_1 = arith.constant 0 : i32
    %7 = vector.broadcast %c0_i32_1 : i32 to vector<16x256xi32>
    %8 = arith.cmpi slt, %4, %7 : vector<16x256xi32>
    %c0_i32_2 = arith.constant 0 : i32
    %9 = arith.cmpi slt, %2, %c0_i32_2 : i32
    %10 = vector.broadcast %9 : i1 to vector<16x256xi1>
    %11 = vector.broadcast %10 : vector<16x256xi1> to vector<16x256xi1>
    %12 = arith.xori %8, %11 : vector<16x256xi1>
    %13 = arith.andi %12, %6 : vector<16x256xi1>
    %14 = vector.broadcast %2 : i32 to vector<16x256xi32>
    %15 = arith.addi %4, %14 : vector<16x256xi32>
    %16 = arith.select %13, %15, %4 : vector<16x256xi1>, vector<16x256xi32>
    %c16_i32 = arith.constant 16 : i32
    %c0_i32_3 = arith.constant 0 : i32
    %17 = arith.cmpi eq, %c16_i32, %c0_i32_3 : i32
    %c1_i32_4 = arith.constant 1 : i32
    %18 = arith.select %17, %c1_i32_4, %c16_i32 : i32
    %19 = vector.broadcast %18 : i32 to vector<16x256xi32>
    %20 = arith.remsi %16, %19 : vector<16x256xi32>
    %c0_i32_5 = arith.constant 0 : i32
    %21 = vector.broadcast %c0_i32_5 : i32 to vector<16x256xi32>
    %22 = arith.cmpi ne, %20, %21 : vector<16x256xi32>
    %c0_i32_6 = arith.constant 0 : i32
    %23 = vector.broadcast %c0_i32_6 : i32 to vector<16x256xi32>
    %24 = arith.cmpi slt, %20, %23 : vector<16x256xi32>
    %c0_i32_7 = arith.constant 0 : i32
    %25 = arith.cmpi slt, %18, %c0_i32_7 : i32
    %26 = vector.broadcast %25 : i1 to vector<16x256xi1>
    %27 = vector.broadcast %26 : vector<16x256xi1> to vector<16x256xi1>
    %28 = arith.xori %24, %27 : vector<16x256xi1>
    %29 = arith.andi %28, %22 : vector<16x256xi1>
    %30 = vector.broadcast %18 : i32 to vector<16x256xi32>
    %31 = arith.addi %20, %30 : vector<16x256xi32>
    %32 = arith.select %29, %31, %20 : vector<16x256xi1>, vector<16x256xi32>
    %c-1_i32 = arith.constant -1 : i32
    %33 = vector.broadcast %c-1_i32 : i32 to vector<16x256xi32>
    %34 = arith.addi %32, %33 : vector<16x256xi32>
    %c0_i32_8 = arith.constant 0 : i32
    %35 = vector.broadcast %c0_i32_8 : i32 to vector<16x256xi32>
    %36 = arith.cmpi sge, %34, %35 : vector<16x256xi32>
    %c-1_i32_9 = arith.constant -1 : i32
    %37 = vector.broadcast %c-1_i32_9 : i32 to vector<16x256xi32>
    %38 = arith.addi %32, %37 : vector<16x256xi32>
    %c16_i32_10 = arith.constant 16 : i32
    %39 = vector.broadcast %c16_i32_10 : i32 to vector<16x256xi32>
    %40 = arith.cmpi slt, %38, %39 : vector<16x256xi32>
    %41 = arith.andi %36, %40 : vector<16x256xi1>
    %c-17_i32 = arith.constant -17 : i32
    %42 = vector.broadcast %c-17_i32 : i32 to vector<16x256xi32>
    %43 = arith.addi %16, %42 : vector<16x256xi32>
    %c0_i32_11 = arith.constant 0 : i32
    %44 = vector.broadcast %c0_i32_11 : i32 to vector<16x256xi32>
    %45 = arith.cmpi sge, %43, %44 : vector<16x256xi32>
    %c-17_i32_12 = arith.constant -17 : i32
    %46 = vector.broadcast %c-17_i32_12 : i32 to vector<16x256xi32>
    %47 = arith.addi %16, %46 : vector<16x256xi32>
    %c256_i32_13 = arith.constant 256 : i32
    %48 = vector.broadcast %c256_i32_13 : i32 to vector<16x256xi32>
    %49 = arith.cmpi slt, %47, %48 : vector<16x256xi32>
    %50 = arith.andi %45, %49 : vector<16x256xi1>
    %51 = arith.andi %41, %50 : vector<16x256xi1>
    %c0_i32_14 = arith.constant 0 : i32
    %52 = vector.broadcast %c0_i32_14 : i32 to vector<16x256xi32>
    %53 = arith.addi %32, %52 : vector<16x256xi32>
    %c0_i32_15 = arith.constant 0 : i32
    %54 = vector.broadcast %c0_i32_15 : i32 to vector<16x256xi32>
    %55 = arith.cmpi sge, %53, %54 : vector<16x256xi32>
    %c0_i32_16 = arith.constant 0 : i32
    %56 = vector.broadcast %c0_i32_16 : i32 to vector<16x256xi32>
    %57 = arith.addi %32, %56 : vector<16x256xi32>
    %c16_i32_17 = arith.constant 16 : i32
    %58 = vector.broadcast %c16_i32_17 : i32 to vector<16x256xi32>
    %59 = arith.cmpi slt, %57, %58 : vector<16x256xi32>
    %60 = arith.andi %55, %59 : vector<16x256xi1>
    %c-16_i32 = arith.constant -16 : i32
    %61 = vector.broadcast %c-16_i32 : i32 to vector<16x256xi32>
    %62 = arith.addi %16, %61 : vector<16x256xi32>
    %c0_i32_18 = arith.constant 0 : i32
    %63 = vector.broadcast %c0_i32_18 : i32 to vector<16x256xi32>
    %64 = arith.cmpi sge, %62, %63 : vector<16x256xi32>
    %c-16_i32_19 = arith.constant -16 : i32
    %65 = vector.broadcast %c-16_i32_19 : i32 to vector<16x256xi32>
    %66 = arith.addi %16, %65 : vector<16x256xi32>
    %c256_i32_20 = arith.constant 256 : i32
    %67 = vector.broadcast %c256_i32_20 : i32 to vector<16x256xi32>
    %68 = arith.cmpi slt, %66, %67 : vector<16x256xi32>
    %69 = arith.andi %64, %68 : vector<16x256xi1>
    %70 = arith.andi %60, %69 : vector<16x256xi1>
    %c1_i32_21 = arith.constant 1 : i32
    %71 = vector.broadcast %c1_i32_21 : i32 to vector<16x256xi32>
    %72 = arith.addi %32, %71 : vector<16x256xi32>
    %c0_i32_22 = arith.constant 0 : i32
    %73 = vector.broadcast %c0_i32_22 : i32 to vector<16x256xi32>
    %74 = arith.cmpi sge, %72, %73 : vector<16x256xi32>
    %c1_i32_23 = arith.constant 1 : i32
    %75 = vector.broadcast %c1_i32_23 : i32 to vector<16x256xi32>
    %76 = arith.addi %32, %75 : vector<16x256xi32>
    %c16_i32_24 = arith.constant 16 : i32
    %77 = vector.broadcast %c16_i32_24 : i32 to vector<16x256xi32>
    %78 = arith.cmpi slt, %76, %77 : vector<16x256xi32>
    %79 = arith.andi %74, %78 : vector<16x256xi1>
    %c-15_i32 = arith.constant -15 : i32
    %80 = vector.broadcast %c-15_i32 : i32 to vector<16x256xi32>
    %81 = arith.addi %16, %80 : vector<16x256xi32>
    %c0_i32_25 = arith.constant 0 : i32
    %82 = vector.broadcast %c0_i32_25 : i32 to vector<16x256xi32>
    %83 = arith.cmpi sge, %81, %82 : vector<16x256xi32>
    %c-15_i32_26 = arith.constant -15 : i32
    %84 = vector.broadcast %c-15_i32_26 : i32 to vector<16x256xi32>
    %85 = arith.addi %16, %84 : vector<16x256xi32>
    %c256_i32_27 = arith.constant 256 : i32
    %86 = vector.broadcast %c256_i32_27 : i32 to vector<16x256xi32>
    %87 = arith.cmpi slt, %85, %86 : vector<16x256xi32>
    %88 = arith.andi %83, %87 : vector<16x256xi1>
    %89 = arith.andi %79, %88 : vector<16x256xi1>
    %c-1_i32_28 = arith.constant -1 : i32
    %90 = vector.broadcast %c-1_i32_28 : i32 to vector<16x256xi32>
    %91 = arith.addi %32, %90 : vector<16x256xi32>
    %c0_i32_29 = arith.constant 0 : i32
    %92 = vector.broadcast %c0_i32_29 : i32 to vector<16x256xi32>
    %93 = arith.cmpi sge, %91, %92 : vector<16x256xi32>
    %c-1_i32_30 = arith.constant -1 : i32
    %94 = vector.broadcast %c-1_i32_30 : i32 to vector<16x256xi32>
    %95 = arith.addi %32, %94 : vector<16x256xi32>
    %c16_i32_31 = arith.constant 16 : i32
    %96 = vector.broadcast %c16_i32_31 : i32 to vector<16x256xi32>
    %97 = arith.cmpi slt, %95, %96 : vector<16x256xi32>
    %98 = arith.andi %93, %97 : vector<16x256xi1>
    %c-1_i32_32 = arith.constant -1 : i32
    %99 = vector.broadcast %c-1_i32_32 : i32 to vector<16x256xi32>
    %100 = arith.addi %16, %99 : vector<16x256xi32>
    %c0_i32_33 = arith.constant 0 : i32
    %101 = vector.broadcast %c0_i32_33 : i32 to vector<16x256xi32>
    %102 = arith.cmpi sge, %100, %101 : vector<16x256xi32>
    %c-1_i32_34 = arith.constant -1 : i32
    %103 = vector.broadcast %c-1_i32_34 : i32 to vector<16x256xi32>
    %104 = arith.addi %16, %103 : vector<16x256xi32>
    %c256_i32_35 = arith.constant 256 : i32
    %105 = vector.broadcast %c256_i32_35 : i32 to vector<16x256xi32>
    %106 = arith.cmpi slt, %104, %105 : vector<16x256xi32>
    %107 = arith.andi %102, %106 : vector<16x256xi1>
    %108 = arith.andi %98, %107 : vector<16x256xi1>
    %c1_i32_36 = arith.constant 1 : i32
    %109 = vector.broadcast %c1_i32_36 : i32 to vector<16x256xi32>
    %110 = arith.addi %32, %109 : vector<16x256xi32>
    %c0_i32_37 = arith.constant 0 : i32
    %111 = vector.broadcast %c0_i32_37 : i32 to vector<16x256xi32>
    %112 = arith.cmpi sge, %110, %111 : vector<16x256xi32>
    %c1_i32_38 = arith.constant 1 : i32
    %113 = vector.broadcast %c1_i32_38 : i32 to vector<16x256xi32>
    %114 = arith.addi %32, %113 : vector<16x256xi32>
    %c16_i32_39 = arith.constant 16 : i32
    %115 = vector.broadcast %c16_i32_39 : i32 to vector<16x256xi32>
    %116 = arith.cmpi slt, %114, %115 : vector<16x256xi32>
    %117 = arith.andi %112, %116 : vector<16x256xi1>
    %c1_i32_40 = arith.constant 1 : i32
    %118 = vector.broadcast %c1_i32_40 : i32 to vector<16x256xi32>
    %119 = arith.addi %16, %118 : vector<16x256xi32>
    %c0_i32_41 = arith.constant 0 : i32
    %120 = vector.broadcast %c0_i32_41 : i32 to vector<16x256xi32>
    %121 = arith.cmpi sge, %119, %120 : vector<16x256xi32>
    %c1_i32_42 = arith.constant 1 : i32
    %122 = vector.broadcast %c1_i32_42 : i32 to vector<16x256xi32>
    %123 = arith.addi %16, %122 : vector<16x256xi32>
    %c256_i32_43 = arith.constant 256 : i32
    %124 = vector.broadcast %c256_i32_43 : i32 to vector<16x256xi32>
    %125 = arith.cmpi slt, %123, %124 : vector<16x256xi32>
    %126 = arith.andi %121, %125 : vector<16x256xi1>
    %127 = arith.andi %117, %126 : vector<16x256xi1>
    %c-1_i32_44 = arith.constant -1 : i32
    %128 = vector.broadcast %c-1_i32_44 : i32 to vector<16x256xi32>
    %129 = arith.addi %32, %128 : vector<16x256xi32>
    %c0_i32_45 = arith.constant 0 : i32
    %130 = vector.broadcast %c0_i32_45 : i32 to vector<16x256xi32>
    %131 = arith.cmpi sge, %129, %130 : vector<16x256xi32>
    %c-1_i32_46 = arith.constant -1 : i32
    %132 = vector.broadcast %c-1_i32_46 : i32 to vector<16x256xi32>
    %133 = arith.addi %32, %132 : vector<16x256xi32>
    %c16_i32_47 = arith.constant 16 : i32
    %134 = vector.broadcast %c16_i32_47 : i32 to vector<16x256xi32>
    %135 = arith.cmpi slt, %133, %134 : vector<16x256xi32>
    %136 = arith.andi %131, %135 : vector<16x256xi1>
    %c15_i32 = arith.constant 15 : i32
    %137 = vector.broadcast %c15_i32 : i32 to vector<16x256xi32>
    %138 = arith.addi %16, %137 : vector<16x256xi32>
    %c0_i32_48 = arith.constant 0 : i32
    %139 = vector.broadcast %c0_i32_48 : i32 to vector<16x256xi32>
    %140 = arith.cmpi sge, %138, %139 : vector<16x256xi32>
    %c15_i32_49 = arith.constant 15 : i32
    %141 = vector.broadcast %c15_i32_49 : i32 to vector<16x256xi32>
    %142 = arith.addi %16, %141 : vector<16x256xi32>
    %c256_i32_50 = arith.constant 256 : i32
    %143 = vector.broadcast %c256_i32_50 : i32 to vector<16x256xi32>
    %144 = arith.cmpi slt, %142, %143 : vector<16x256xi32>
    %145 = arith.andi %140, %144 : vector<16x256xi1>
    %146 = arith.andi %136, %145 : vector<16x256xi1>
    %c0_i32_51 = arith.constant 0 : i32
    %147 = vector.broadcast %c0_i32_51 : i32 to vector<16x256xi32>
    %148 = arith.addi %32, %147 : vector<16x256xi32>
    %c0_i32_52 = arith.constant 0 : i32
    %149 = vector.broadcast %c0_i32_52 : i32 to vector<16x256xi32>
    %150 = arith.cmpi sge, %148, %149 : vector<16x256xi32>
    %c0_i32_53 = arith.constant 0 : i32
    %151 = vector.broadcast %c0_i32_53 : i32 to vector<16x256xi32>
    %152 = arith.addi %32, %151 : vector<16x256xi32>
    %c16_i32_54 = arith.constant 16 : i32
    %153 = vector.broadcast %c16_i32_54 : i32 to vector<16x256xi32>
    %154 = arith.cmpi slt, %152, %153 : vector<16x256xi32>
    %155 = arith.andi %150, %154 : vector<16x256xi1>
    %c16_i32_55 = arith.constant 16 : i32
    %156 = vector.broadcast %c16_i32_55 : i32 to vector<16x256xi32>
    %157 = arith.addi %16, %156 : vector<16x256xi32>
    %c0_i32_56 = arith.constant 0 : i32
    %158 = vector.broadcast %c0_i32_56 : i32 to vector<16x256xi32>
    %159 = arith.cmpi sge, %157, %158 : vector<16x256xi32>
    %c16_i32_57 = arith.constant 16 : i32
    %160 = vector.broadcast %c16_i32_57 : i32 to vector<16x256xi32>
    %161 = arith.addi %16, %160 : vector<16x256xi32>
    %c256_i32_58 = arith.constant 256 : i32
    %162 = vector.broadcast %c256_i32_58 : i32 to vector<16x256xi32>
    %163 = arith.cmpi slt, %161, %162 : vector<16x256xi32>
    %164 = arith.andi %159, %163 : vector<16x256xi1>
    %165 = arith.andi %155, %164 : vector<16x256xi1>
    %c1_i32_59 = arith.constant 1 : i32
    %166 = vector.broadcast %c1_i32_59 : i32 to vector<16x256xi32>
    %167 = arith.addi %32, %166 : vector<16x256xi32>
    %c0_i32_60 = arith.constant 0 : i32
    %168 = vector.broadcast %c0_i32_60 : i32 to vector<16x256xi32>
    %169 = arith.cmpi sge, %167, %168 : vector<16x256xi32>
    %c1_i32_61 = arith.constant 1 : i32
    %170 = vector.broadcast %c1_i32_61 : i32 to vector<16x256xi32>
    %171 = arith.addi %32, %170 : vector<16x256xi32>
    %c16_i32_62 = arith.constant 16 : i32
    %172 = vector.broadcast %c16_i32_62 : i32 to vector<16x256xi32>
    %173 = arith.cmpi slt, %171, %172 : vector<16x256xi32>
    %174 = arith.andi %169, %173 : vector<16x256xi1>
    %c17_i32 = arith.constant 17 : i32
    %175 = vector.broadcast %c17_i32 : i32 to vector<16x256xi32>
    %176 = arith.addi %16, %175 : vector<16x256xi32>
    %c0_i32_63 = arith.constant 0 : i32
    %177 = vector.broadcast %c0_i32_63 : i32 to vector<16x256xi32>
    %178 = arith.cmpi sge, %176, %177 : vector<16x256xi32>
    %c17_i32_64 = arith.constant 17 : i32
    %179 = vector.broadcast %c17_i32_64 : i32 to vector<16x256xi32>
    %180 = arith.addi %16, %179 : vector<16x256xi32>
    %c256_i32_65 = arith.constant 256 : i32
    %181 = vector.broadcast %c256_i32_65 : i32 to vector<16x256xi32>
    %182 = arith.cmpi slt, %180, %181 : vector<16x256xi32>
    %183 = arith.andi %178, %182 : vector<16x256xi1>
    %184 = arith.andi %174, %183 : vector<16x256xi1>
    %c0 = arith.constant 0 : index
    %c0_66 = arith.constant 0 : index
    %185 = vector.load %arg1[%c0, %c0_66] : memref<32x256xf32, #tpu.memory_space<vmem>>, vector<32x256xf32>
    %c0_67 = arith.constant 0 : index
    %c0_68 = arith.constant 0 : index
    %186 = vector.load %arg2[%c0_67, %c0_68] : memref<16x256xf32, #tpu.memory_space<vmem>>, vector<16x256xf32>
    %c0_69 = arith.constant 0 : index
    %c0_70 = arith.constant 0 : index
    %187 = vector.load %arg3[%c0_69, %c0_70] : memref<17x32xf32, #tpu.memory_space<vmem>>, vector<17x32xf32>
    %cst = arith.constant dense<0.000000e+00> : vector<17x256xf32>
    %188 = tpu.matmul %187, %185, %cst {dimension_numbers = #tpu.dot_dimension_numbers<[1], [0], [0], [1], [0, 0, 1, 1], [], []>} : vector<17x32xf32>, vector<32x256xf32>, vector<17x256xf32> -> vector<17x256xf32>
    %c0_71 = arith.constant 0 : index
    %c0_72 = arith.constant 0 : index
    %189 = vector.load %arg4[%c0_71, %c0_72] : memref<17x1xf32, #tpu.memory_space<vmem>>, vector<17x1xf32>
    %190 = vector.broadcast %189 : vector<17x1xf32> to vector<17x256xf32>
    %191 = arith.addf %188, %190 : vector<17x256xf32>
    %192 = vector.extract_strided_slice %191 {offsets = [0, 0], sizes = [16, 256], strides = [1, 1]} : vector<17x256xf32> to vector<16x256xf32>
    %cst_73 = arith.constant 0.000000e+00 : f32
    %193 = vector.broadcast %cst_73 : f32 to vector<16x256xf32>
    %194 = arith.maximumf %192, %193 : vector<16x256xf32>
    %195 = vector.extract_strided_slice %191 {offsets = [16, 0], sizes = [1, 256], strides = [1, 1]} : vector<17x256xf32> to vector<1x256xf32>
    %196 = arith.negf %195 : vector<1x256xf32>
    %197 = math.exp %196 : vector<1x256xf32>
    %cst_74 = arith.constant 1.000000e+00 : f32
    %198 = vector.broadcast %cst_74 : f32 to vector<1x256xf32>
    %199 = arith.addf %198, %197 : vector<1x256xf32>
    %200 = arith.divf %198, %199 : vector<1x256xf32>
    %201 = vector.broadcast %200 : vector<1x256xf32> to vector<16x256xf32>
    %202 = arith.mulf %201, %186 : vector<16x256xf32>
    %c0_75 = arith.constant 0 : index
    %c0_76 = arith.constant 0 : index
    %203 = vector.load %arg5[%c0_75, %c0_76] : memref<16x144xf32, #tpu.memory_space<vmem>>, vector<16x144xf32>
    %c17_i32_77 = arith.constant 17 : i32
    %204 = tpu.dynamic_rotate %202 by %c17_i32_77 dim 1 : vector<16x256xf32>, i32 -> vector<16x256xf32>
    %cst_78 = arith.constant 0.000000e+00 : f32
    %205 = vector.broadcast %cst_78 : f32 to vector<16x256xf32>
    %206 = arith.select %51, %204, %205 : vector<16x256xi1>, vector<16x256xf32>
    %c16_i32_79 = arith.constant 16 : i32
    %207 = tpu.dynamic_rotate %202 by %c16_i32_79 dim 1 : vector<16x256xf32>, i32 -> vector<16x256xf32>
    %cst_80 = arith.constant 0.000000e+00 : f32
    %208 = vector.broadcast %cst_80 : f32 to vector<16x256xf32>
    %209 = arith.select %70, %207, %208 : vector<16x256xi1>, vector<16x256xf32>
    %c15_i32_81 = arith.constant 15 : i32
    %210 = tpu.dynamic_rotate %202 by %c15_i32_81 dim 1 : vector<16x256xf32>, i32 -> vector<16x256xf32>
    %cst_82 = arith.constant 0.000000e+00 : f32
    %211 = vector.broadcast %cst_82 : f32 to vector<16x256xf32>
    %212 = arith.select %89, %210, %211 : vector<16x256xi1>, vector<16x256xf32>
    %c1_i32_83 = arith.constant 1 : i32
    %213 = tpu.dynamic_rotate %202 by %c1_i32_83 dim 1 : vector<16x256xf32>, i32 -> vector<16x256xf32>
    %cst_84 = arith.constant 0.000000e+00 : f32
    %214 = vector.broadcast %cst_84 : f32 to vector<16x256xf32>
    %215 = arith.select %108, %213, %214 : vector<16x256xi1>, vector<16x256xf32>
    %c255_i32 = arith.constant 255 : i32
    %216 = tpu.dynamic_rotate %202 by %c255_i32 dim 1 : vector<16x256xf32>, i32 -> vector<16x256xf32>
    %cst_85 = arith.constant 0.000000e+00 : f32
    %217 = vector.broadcast %cst_85 : f32 to vector<16x256xf32>
    %218 = arith.select %127, %216, %217 : vector<16x256xi1>, vector<16x256xf32>
    %c241_i32 = arith.constant 241 : i32
    %219 = tpu.dynamic_rotate %202 by %c241_i32 dim 1 : vector<16x256xf32>, i32 -> vector<16x256xf32>
    %cst_86 = arith.constant 0.000000e+00 : f32
    %220 = vector.broadcast %cst_86 : f32 to vector<16x256xf32>
    %221 = arith.select %146, %219, %220 : vector<16x256xi1>, vector<16x256xf32>
    %c240_i32 = arith.constant 240 : i32
    %222 = tpu.dynamic_rotate %202 by %c240_i32 dim 1 : vector<16x256xf32>, i32 -> vector<16x256xf32>
    %cst_87 = arith.constant 0.000000e+00 : f32
    %223 = vector.broadcast %cst_87 : f32 to vector<16x256xf32>
    %224 = arith.select %165, %222, %223 : vector<16x256xi1>, vector<16x256xf32>
    %c239_i32 = arith.constant 239 : i32
    %225 = tpu.dynamic_rotate %202 by %c239_i32 dim 1 : vector<16x256xf32>, i32 -> vector<16x256xf32>
    %cst_88 = arith.constant 0.000000e+00 : f32
    %226 = vector.broadcast %cst_88 : f32 to vector<16x256xf32>
    %227 = arith.select %184, %225, %226 : vector<16x256xi1>, vector<16x256xf32>
    %228 = tpu.concatenate %206, %209, %212, %215, %202, %218, %221, %224, %227 in 0 : vector<16x256xf32>, vector<16x256xf32>, vector<16x256xf32>, vector<16x256xf32>, vector<16x256xf32>, vector<16x256xf32>, vector<16x256xf32>, vector<16x256xf32>, vector<16x256xf32> -> vector<144x256xf32>
    %cst_89 = arith.constant dense<0.000000e+00> : vector<16x256xf32>
    %229 = tpu.matmul %203, %228, %cst_89 {dimension_numbers = #tpu.dot_dimension_numbers<[1], [0], [0], [1], [0, 0, 1, 1], [], []>} : vector<16x144xf32>, vector<144x256xf32>, vector<16x256xf32> -> vector<16x256xf32>
    %c0_90 = arith.constant 0 : index
    %c0_91 = arith.constant 0 : index
    %230 = vector.load %arg6[%c0_90, %c0_91] : memref<16x1xf32, #tpu.memory_space<vmem>>, vector<16x1xf32>
    %231 = vector.broadcast %230 : vector<16x1xf32> to vector<16x256xf32>
    %232 = arith.addf %229, %231 : vector<16x256xf32>
    %cst_92 = arith.constant 0.000000e+00 : f32
    %233 = vector.broadcast %cst_92 : f32 to vector<16x256xf32>
    %234 = arith.maximumf %232, %233 : vector<16x256xf32>
    %235 = arith.addf %234, %186 : vector<16x256xf32>
    %c0_93 = arith.constant 0 : index
    %c0_94 = arith.constant 0 : index
    %236 = vector.load %arg7[%c0_93, %c0_94] : memref<16x144xf32, #tpu.memory_space<vmem>>, vector<16x144xf32>
    %c17_i32_95 = arith.constant 17 : i32
    %237 = tpu.dynamic_rotate %235 by %c17_i32_95 dim 1 : vector<16x256xf32>, i32 -> vector<16x256xf32>
    %cst_96 = arith.constant 0.000000e+00 : f32
    %238 = vector.broadcast %cst_96 : f32 to vector<16x256xf32>
    %239 = arith.select %51, %237, %238 : vector<16x256xi1>, vector<16x256xf32>
    %c16_i32_97 = arith.constant 16 : i32
    %240 = tpu.dynamic_rotate %235 by %c16_i32_97 dim 1 : vector<16x256xf32>, i32 -> vector<16x256xf32>
    %cst_98 = arith.constant 0.000000e+00 : f32
    %241 = vector.broadcast %cst_98 : f32 to vector<16x256xf32>
    %242 = arith.select %70, %240, %241 : vector<16x256xi1>, vector<16x256xf32>
    %c15_i32_99 = arith.constant 15 : i32
    %243 = tpu.dynamic_rotate %235 by %c15_i32_99 dim 1 : vector<16x256xf32>, i32 -> vector<16x256xf32>
    %cst_100 = arith.constant 0.000000e+00 : f32
    %244 = vector.broadcast %cst_100 : f32 to vector<16x256xf32>
    %245 = arith.select %89, %243, %244 : vector<16x256xi1>, vector<16x256xf32>
    %c1_i32_101 = arith.constant 1 : i32
    %246 = tpu.dynamic_rotate %235 by %c1_i32_101 dim 1 : vector<16x256xf32>, i32 -> vector<16x256xf32>
    %cst_102 = arith.constant 0.000000e+00 : f32
    %247 = vector.broadcast %cst_102 : f32 to vector<16x256xf32>
    %248 = arith.select %108, %246, %247 : vector<16x256xi1>, vector<16x256xf32>
    %c255_i32_103 = arith.constant 255 : i32
    %249 = tpu.dynamic_rotate %235 by %c255_i32_103 dim 1 : vector<16x256xf32>, i32 -> vector<16x256xf32>
    %cst_104 = arith.constant 0.000000e+00 : f32
    %250 = vector.broadcast %cst_104 : f32 to vector<16x256xf32>
    %251 = arith.select %127, %249, %250 : vector<16x256xi1>, vector<16x256xf32>
    %c241_i32_105 = arith.constant 241 : i32
    %252 = tpu.dynamic_rotate %235 by %c241_i32_105 dim 1 : vector<16x256xf32>, i32 -> vector<16x256xf32>
    %cst_106 = arith.constant 0.000000e+00 : f32
    %253 = vector.broadcast %cst_106 : f32 to vector<16x256xf32>
    %254 = arith.select %146, %252, %253 : vector<16x256xi1>, vector<16x256xf32>
    %c240_i32_107 = arith.constant 240 : i32
    %255 = tpu.dynamic_rotate %235 by %c240_i32_107 dim 1 : vector<16x256xf32>, i32 -> vector<16x256xf32>
    %cst_108 = arith.constant 0.000000e+00 : f32
    %256 = vector.broadcast %cst_108 : f32 to vector<16x256xf32>
    %257 = arith.select %165, %255, %256 : vector<16x256xi1>, vector<16x256xf32>
    %c239_i32_109 = arith.constant 239 : i32
    %258 = tpu.dynamic_rotate %235 by %c239_i32_109 dim 1 : vector<16x256xf32>, i32 -> vector<16x256xf32>
    %cst_110 = arith.constant 0.000000e+00 : f32
    %259 = vector.broadcast %cst_110 : f32 to vector<16x256xf32>
    %260 = arith.select %184, %258, %259 : vector<16x256xi1>, vector<16x256xf32>
    %261 = tpu.concatenate %239, %242, %245, %248, %235, %251, %254, %257, %260 in 0 : vector<16x256xf32>, vector<16x256xf32>, vector<16x256xf32>, vector<16x256xf32>, vector<16x256xf32>, vector<16x256xf32>, vector<16x256xf32>, vector<16x256xf32>, vector<16x256xf32> -> vector<144x256xf32>
    %cst_111 = arith.constant dense<0.000000e+00> : vector<16x256xf32>
    %262 = tpu.matmul %236, %261, %cst_111 {dimension_numbers = #tpu.dot_dimension_numbers<[1], [0], [0], [1], [0, 0, 1, 1], [], []>} : vector<16x144xf32>, vector<144x256xf32>, vector<16x256xf32> -> vector<16x256xf32>
    %c0_112 = arith.constant 0 : index
    %c0_113 = arith.constant 0 : index
    %263 = vector.load %arg8[%c0_112, %c0_113] : memref<16x1xf32, #tpu.memory_space<vmem>>, vector<16x1xf32>
    %264 = vector.broadcast %263 : vector<16x1xf32> to vector<16x256xf32>
    %265 = arith.addf %262, %264 : vector<16x256xf32>
    %cst_114 = arith.constant 0.000000e+00 : f32
    %266 = vector.broadcast %cst_114 : f32 to vector<16x256xf32>
    %267 = arith.maximumf %265, %266 : vector<16x256xf32>
    %268 = arith.addf %267, %194 : vector<16x256xf32>
    %c0_115 = arith.constant 0 : index
    %c0_116 = arith.constant 0 : index
    %269 = vector.load %arg9[%c0_115, %c0_116] : memref<16x144xf32, #tpu.memory_space<vmem>>, vector<16x144xf32>
    %c17_i32_117 = arith.constant 17 : i32
    %270 = tpu.dynamic_rotate %268 by %c17_i32_117 dim 1 : vector<16x256xf32>, i32 -> vector<16x256xf32>
    %cst_118 = arith.constant 0.000000e+00 : f32
    %271 = vector.broadcast %cst_118 : f32 to vector<16x256xf32>
    %272 = arith.select %51, %270, %271 : vector<16x256xi1>, vector<16x256xf32>
    %c16_i32_119 = arith.constant 16 : i32
    %273 = tpu.dynamic_rotate %268 by %c16_i32_119 dim 1 : vector<16x256xf32>, i32 -> vector<16x256xf32>
    %cst_120 = arith.constant 0.000000e+00 : f32
    %274 = vector.broadcast %cst_120 : f32 to vector<16x256xf32>
    %275 = arith.select %70, %273, %274 : vector<16x256xi1>, vector<16x256xf32>
    %c15_i32_121 = arith.constant 15 : i32
    %276 = tpu.dynamic_rotate %268 by %c15_i32_121 dim 1 : vector<16x256xf32>, i32 -> vector<16x256xf32>
    %cst_122 = arith.constant 0.000000e+00 : f32
    %277 = vector.broadcast %cst_122 : f32 to vector<16x256xf32>
    %278 = arith.select %89, %276, %277 : vector<16x256xi1>, vector<16x256xf32>
    %c1_i32_123 = arith.constant 1 : i32
    %279 = tpu.dynamic_rotate %268 by %c1_i32_123 dim 1 : vector<16x256xf32>, i32 -> vector<16x256xf32>
    %cst_124 = arith.constant 0.000000e+00 : f32
    %280 = vector.broadcast %cst_124 : f32 to vector<16x256xf32>
    %281 = arith.select %108, %279, %280 : vector<16x256xi1>, vector<16x256xf32>
    %c255_i32_125 = arith.constant 255 : i32
    %282 = tpu.dynamic_rotate %268 by %c255_i32_125 dim 1 : vector<16x256xf32>, i32 -> vector<16x256xf32>
    %cst_126 = arith.constant 0.000000e+00 : f32
    %283 = vector.broadcast %cst_126 : f32 to vector<16x256xf32>
    %284 = arith.select %127, %282, %283 : vector<16x256xi1>, vector<16x256xf32>
    %c241_i32_127 = arith.constant 241 : i32
    %285 = tpu.dynamic_rotate %268 by %c241_i32_127 dim 1 : vector<16x256xf32>, i32 -> vector<16x256xf32>
    %cst_128 = arith.constant 0.000000e+00 : f32
    %286 = vector.broadcast %cst_128 : f32 to vector<16x256xf32>
    %287 = arith.select %146, %285, %286 : vector<16x256xi1>, vector<16x256xf32>
    %c240_i32_129 = arith.constant 240 : i32
    %288 = tpu.dynamic_rotate %268 by %c240_i32_129 dim 1 : vector<16x256xf32>, i32 -> vector<16x256xf32>
    %cst_130 = arith.constant 0.000000e+00 : f32
    %289 = vector.broadcast %cst_130 : f32 to vector<16x256xf32>
    %290 = arith.select %165, %288, %289 : vector<16x256xi1>, vector<16x256xf32>
    %c239_i32_131 = arith.constant 239 : i32
    %291 = tpu.dynamic_rotate %268 by %c239_i32_131 dim 1 : vector<16x256xf32>, i32 -> vector<16x256xf32>
    %cst_132 = arith.constant 0.000000e+00 : f32
    %292 = vector.broadcast %cst_132 : f32 to vector<16x256xf32>
    %293 = arith.select %184, %291, %292 : vector<16x256xi1>, vector<16x256xf32>
    %294 = tpu.concatenate %272, %275, %278, %281, %268, %284, %287, %290, %293 in 0 : vector<16x256xf32>, vector<16x256xf32>, vector<16x256xf32>, vector<16x256xf32>, vector<16x256xf32>, vector<16x256xf32>, vector<16x256xf32>, vector<16x256xf32>, vector<16x256xf32> -> vector<144x256xf32>
    %cst_133 = arith.constant dense<0.000000e+00> : vector<16x256xf32>
    %295 = tpu.matmul %269, %294, %cst_133 {dimension_numbers = #tpu.dot_dimension_numbers<[1], [0], [0], [1], [0, 0, 1, 1], [], []>} : vector<16x144xf32>, vector<144x256xf32>, vector<16x256xf32> -> vector<16x256xf32>
    %c0_134 = arith.constant 0 : index
    %c0_135 = arith.constant 0 : index
    %296 = vector.load %arg10[%c0_134, %c0_135] : memref<16x1xf32, #tpu.memory_space<vmem>>, vector<16x1xf32>
    %297 = vector.broadcast %296 : vector<16x1xf32> to vector<16x256xf32>
    %298 = arith.addf %295, %297 : vector<16x256xf32>
    %cst_136 = arith.constant 0.000000e+00 : f32
    %299 = vector.broadcast %cst_136 : f32 to vector<16x256xf32>
    %300 = arith.maximumf %298, %299 : vector<16x256xf32>
    %c0_137 = arith.constant 0 : index
    %c0_138 = arith.constant 0 : index
    %301 = vector.load %arg11[%c0_137, %c0_138] : memref<16x256xf32, #tpu.memory_space<vmem>>, vector<16x256xf32>
    tpu.vector_store %arg11[%c0_137, %c0_138], %300 {strides = array<i32>} : memref<16x256xf32, #tpu.memory_space<vmem>>, vector<16x256xf32>,
    return
  }
  func.func @transform_0(%arg0: i32) -> (i32, i32) {
    %c0_i32 = arith.constant 0 : i32
    %c0_i32_0 = arith.constant 0 : i32
    return %c0_i32, %arg0 : i32, i32
  }
  func.func @transform_1(%arg0: i32) -> (i32, i32) {
    %c0_i32 = arith.constant 0 : i32
    %c0_i32_0 = arith.constant 0 : i32
    return %c0_i32, %arg0 : i32, i32
  }
  func.func @transform_2(%arg0: i32) -> (i32, i32) {
    %c0_i32 = arith.constant 0 : i32
    %c0_i32_0 = arith.constant 0 : i32
    %c0_i32_1 = arith.constant 0 : i32
    return %c0_i32, %c0_i32_0 : i32, i32
  }
  func.func @transform_3(%arg0: i32) -> (i32, i32) {
    %c0_i32 = arith.constant 0 : i32
    %c0_i32_0 = arith.constant 0 : i32
    %c0_i32_1 = arith.constant 0 : i32
    return %c0_i32, %c0_i32_0 : i32, i32
  }
  func.func @transform_4(%arg0: i32) -> (i32, i32) {
    %c0_i32 = arith.constant 0 : i32
    %c0_i32_0 = arith.constant 0 : i32
    %c0_i32_1 = arith.constant 0 : i32
    return %c0_i32, %c0_i32_0 : i32, i32
  }
  func.func @transform_5(%arg0: i32) -> (i32, i32) {
    %c0_i32 = arith.constant 0 : i32
    %c0_i32_0 = arith.constant 0 : i32
    %c0_i32_1 = arith.constant 0 : i32
    return %c0_i32, %c0_i32_0 : i32, i32
  }
  func.func @transform_6(%arg0: i32) -> (i32, i32) {
    %c0_i32 = arith.constant 0 : i32
    %c0_i32_0 = arith.constant 0 : i32
    %c0_i32_1 = arith.constant 0 : i32
    return %c0_i32, %c0_i32_0 : i32, i32
  }
  func.func @transform_7(%arg0: i32) -> (i32, i32) {
    %c0_i32 = arith.constant 0 : i32
    %c0_i32_0 = arith.constant 0 : i32
    %c0_i32_1 = arith.constant 0 : i32
    return %c0_i32, %c0_i32_0 : i32, i32
  }
  func.func @transform_8(%arg0: i32) -> (i32, i32) {
    %c0_i32 = arith.constant 0 : i32
    %c0_i32_0 = arith.constant 0 : i32
    %c0_i32_1 = arith.constant 0 : i32
    return %c0_i32, %c0_i32_0 : i32, i32
  }
  func.func @transform_9(%arg0: i32) -> (i32, i32) {
    %c0_i32 = arith.constant 0 : i32
    %c0_i32_0 = arith.constant 0 : i32
    %c0_i32_1 = arith.constant 0 : i32
    return %c0_i32, %c0_i32_0 : i32, i32
  }
  func.func @transform_10(%arg0: i32) -> (i32, i32) {
    %c0_i32 = arith.constant 0 : i32
    %c0_i32_0 = arith.constant 0 : i32
    return %c0_i32, %arg0 : i32, i32
  }
}

</mosaic_0001>

<bundles_post_ra>
// kernel: tpu_custom_call.1
= control target key start
LH: loop header
LB: loop body
LE: loop exit
PB: predicated region body
PF: predicated region fallthrough
CT: control target
= control target key end

     0   :  { %s3383_s0 = inlined_call_operand.hbm [shape: f32[32,512], index: 0, kind: input, shape index: {}]   ;;  %s3384_s1 = inlined_call_operand.vmem [shape: f32[16,512], index: 1, kind: input, shape index: {}]   ;;  %s3385_s2 = inlined_call_operand.hbm [shape: f32[17,32], index: 2, kind: input, shape index: {}]   ;;  %s3386_s3 = inlined_call_operand.vmem [shape: f32[17,1], index: 3, kind: input, shape index: {}]   ;;  %s3387_s4 = inlined_call_operand.hbm [shape: f32[16,144], index: 4, kind: input, shape index: {}]   ;;  %s3388_s5 = inlined_call_operand.vmem [shape: f32[16,1], index: 5, kind: input, shape index: {}]   ;;  %s3389_s6 = inlined_call_operand.vmem [shape: f32[16,144], index: 6, kind: input, shape index: {}]   ;;  %s3390_s7 = inlined_call_operand.vmem [shape: f32[16,1], index: 7, kind: input, shape index: {}]   ;;  %s3391_s8 = inlined_call_operand.hbm [shape: f32[16,144], index: 8, kind: input, shape index: {}]   ;;  %s3392_s9 = inlined_call_operand.vmem [shape: f32[16,1], index: 9, kind: input, shape index: {}]   ;;  %s3393_s10 = inlined_call_operand.hbm [shape: f32[16,512], index: 10, kind: output, shape index: {}]  }
   0x1   :  { %3421 = sst [smem:[#allocation21_spill]] %s3385_s2 }
   0x2   :  { %3422 = sst [smem:[#allocation22_spill]] %s3392_s9 }
   0x3   :  { %3423 = sst [smem:[#allocation23_spill]] %s3393_s10 }
   0x4   :  { %15 = vsyncpa [#allocation3], 0 }
   0x5   :  { %17 = vsyncpa [#allocation3 + $0x1], 0 }
   0x6   :  { %18 = vsyncpa [#allocation7], 0 }
   0x7   :  { %19 = vsyncpa [#allocation10], 0 }
   0x8   :  { %20 = vsyncpa [#allocation4], 0 }
   0x9   :  { %22 = vsyncpa [#allocation4 + $0x1], 0  ;;  %s2514_s13 = smov 0   ;;  %s2516_s14 = smov 0  }
   0xa   :  { %s2518_s15 = smov 0   ;;  %s2520_s16 = smov 0  }
   0xb LB: > { %3424 = sst [smem:[#allocation16_spill]] %s2421_s13  ;;  %s2535_s17 = sadd.s32 4294967295, %s2433_s16   ;;  %s2433_s16 = sphi %s2520_s16, %s3566_s16   ;;  %s2429_s15 = sphi %s2518_s15, %s3570_s15   ;;  %s2425_s14 = sphi %s2516_s14, %s3569_s14   ;;  %s2421_s13 = sphi %s2514_s13, %s3568_s13  }
   0xc   : > { %s1626_s18 = sadd.s32 4294967294, %s2433_s16   ;;  %s2539_s19 = sadd.s32 1, %s2433_s16  }
   0xd   : > { %3425 = sst [smem:[#allocation17_spill]] %s2539_s19  ;;  %s35_s20 = sadd.s32 1, %s2429_s15 }
   0xe   : > { %s32_s21 = ssub.s32 %s2433_s16, %s2539_s19  ;;  %p42_p0 = scmp.ne.s32.totalorder %s2429_s15, %s2425_s14 }
   0xf   : > { %p33_p1 = scmp.eq.s32.totalorder %s32_s21, 0  ;;  %p43_p2 = scmp.eq.s32.totalorder %s2433_s16, 0 }
  0x10   : > { %p48_p3 = scmp.ne.s32.totalorder %s2425_s14, %s2421_s13  ;;  %p3397_p4 = scmp.eq.s32.totalorder %s2535_s17, 0 }
  0x11   : > { %s2551_s22 = scalar_select %p33_p1, %s2429_s15, %s35_s20  }
  0x12   : > { %p2553_p5 = por %p43_p2, %p42_p0  ;;  %p2559_p6 = por %p3397_p4, %p48_p3 }
  0x13   : > { %3426 = sst [smem:[#allocation18_spill]] %s2551_s22  ;;  %p266_p7 = scmp.eq.s32.totalorder %s2535_s17, 1 }
  0x14   : > { %s3427_s23 = scalar_select %p2553_p5, 1, 0 }
  0x15   : > { %s3428_s24 = scalar_select %p2559_p6, 1, 0 }
  0x16   : > { %p272_p8 = scmp.eq.s32.totalorder %s1626_s18, 1  ;;  %p1627_p9 = scmp.ge.s32.totalorder %s2433_s16, 1 }
  0x17   : > { %p279_p10 = scmp.lt.s32.totalorder %s2433_s16, 3  ;;  %p2566_p11 = por %p266_p7, %p42_p0 }
  0x18   : > { %p2570_p12 = por %p272_p8, %p48_p3  ;;  %s2435_s28 = smov [#allocation6]  }
  0x19   : > { %s3429_s25 = scalar_select %p2566_p11, 1, 0 }
  0x1a   : > { %s3431_s26 = scalar_select %p2570_p12, 1, 0 }
  0x1b   : > { %3430 = sst [smem:[#allocation19_spill]] %s3429_s25  ;;  %p2574_p13 = pnand %p1627_p9, %p279_p10 }
  0x1c   : > { %3432 = sst [smem:[#allocation20_spill]] %s3431_s26  ;;  %s291_s29 = sshll.u32 %s2435_s28, 4  ;;  %s292_s29 = int_to_ptr.vmem [resolvable:$true] %s291_s29 }
  0x1d   : > { %s3433_s27 = scalar_select %p2574_p13, 1, 0 }
  0x1e   : > { %p1922_p1 = pneg %p2574_p13  ;;  %s2436_s11 = smov [#allocation8]  }
  0x1f   : > { %s307_s12 = sshll.u32 %s2436_s11, 4  ;;  %s3435_s2 = sld [smem:[#allocation21_spill]]  ;;  %s2586_s12 = int_to_ptr.vmem [resolvable:$true] %s307_s12 }
  0x20   : > { %p2582_p2 = pnand %p1922_p1, %p3397_p4 }
  0x22   : > { %p2596_p3 = pneg %p2582_p2 }
  0x25   : > { %s2247_s21 = scalar_lea.hbm %s3435_s2, 384 }
  0x26   : > { %p2248_p0 = scmp.ne.s32.totalorder %s3435_s2, %s2247_s21  ;;  %p2254_p9 = scmp.lt.u32.totalorder %s2247_s21, %s3435_s2 }
  0x28   : > { %p2250_p7 = pnand %p2596_p3, %p2248_p0 }
  0x2a   : > { %p2251_p8 = pneg %p2250_p7 }
  0x2c   : > { %p2256_p10 = pnand %p2254_p9, %p2251_p8 }
  0x2e   : > { %2259 = shalt.err (!%p2256_p10)
}
  0x2f   : > { %s2260_s18 = scalar_lea.vmem %s292_s29, 384  ;;  %p2268_p11 = scmp.lt.s32.totalorder %s292_s29, %s292_s29 }
  0x30   : > { %p2261_p1 = scmp.ne.s32.totalorder %s292_s29, %s2260_s18  ;;  %p2269_p6 = scmp.lt.s32.totalorder %s2260_s18, %s2260_s18 }
  0x32   : > { %p2263_p4 = pnand %p2261_p1, %p2596_p3  ;;  %p2270_p13 = por %p2269_p6, %p2268_p11 }
  0x34   : > { %p2264_p12 = pneg %p2263_p4 }
  0x36   : > { %p2271_p5 = pnand %p2270_p13, %p2264_p12 }
  0x38   : > { %2274 = shalt.err (!%p2271_p5)
}
  0x39   : > { %s2437_s19 = smov 128   ;;  %s2438_s22 = smov 8  }
  0x3a   : > { %1925 = dma.hbm_to_vmem [thread:$0]  (!%p2582_p2), %s3435_s2, 384, %s292_s29, [#allocation7], %s2437_s19, %s2437_s19, %s2438_s22  }
  0x3b   : > { %s2275_s13 = scalar_lea.hbm %s3387_s4, 512 }
  0x3c   : > { %p2276_p4 = scmp.ne.s32.totalorder %s3387_s4, %s2275_s13  ;;  %p2282_p11 = scmp.lt.u32.totalorder %s2275_s13, %s3387_s4 }
  0x3e   : > { %p2278_p6 = pnand %p2276_p4, %p2596_p3 }
  0x40   : > { %p2279_p5 = pneg %p2278_p6 }
  0x42   : > { %p2284_p12 = pnand %p2282_p11, %p2279_p5 }
  0x44   : > { %2287 = shalt.err (!%p2284_p12)
}
  0x45   : > { %s2288_s29 = scalar_lea.vmem %s2586_s12, 512  ;;  %p2296_p8 = scmp.lt.s32.totalorder %s2586_s12, %s2586_s12 }
  0x46   : > { %p2289_p13 = scmp.ne.s32.totalorder %s2586_s12, %s2288_s29  ;;  %p2297_p9 = scmp.lt.s32.totalorder %s2288_s29, %s2288_s29 }
  0x48   : > { %p2291_p0 = pnand %p2289_p13, %p2596_p3  ;;  %p2298_p10 = por %p2297_p9, %p2296_p8 }
  0x4a   : > { %p2292_p7 = pneg %p2291_p0 }
  0x4c   : > { %p2299_p1 = pnand %p2298_p10, %p2292_p7 }
  0x4e   : > { %2302 = shalt.err (!%p2299_p1)
}
  0x4f   : > { %s2439_s10 = smov 256   ;;  %s2440_s9 = smov 16  }
  0x50   : > { %1928 = dma.hbm_to_vmem [thread:$0]  (!%p2582_p2), %s3387_s4, 512, %s2586_s12, [#allocation7], %s2439_s10, %s2439_s10, %s2440_s9  }
  0x51   : > { %s2441_s19 = smov [#allocation9]   ;;  %s2303_s21 = scalar_lea.hbm %s3391_s8, 512 }
  0x52   : > { %s329_s22 = sshll.u32 %s2441_s19, 4  ;;  %p2304_p4 = scmp.ne.s32.totalorder %s3391_s8, %s2303_s21  ;;  %s330_s22 = int_to_ptr.vmem [resolvable:$true] %s329_s22 }
  0x53   : > { %p2310_p11 = scmp.lt.u32.totalorder %s2303_s21, %s3391_s8 }
  0x54   : > { %p2306_p6 = pnand %p2304_p4, %p2596_p3 }
  0x56   : > { %p2307_p5 = pneg %p2306_p6 }
  0x58   : > { %p2312_p12 = pnand %p2310_p11, %p2307_p5 }
  0x5a   : > { %2315 = shalt.err (!%p2312_p12)
}
  0x5b   : > { %s2316_s12 = scalar_lea.vmem %s330_s22, 512  ;;  %p2324_p8 = scmp.lt.s32.totalorder %s330_s22, %s330_s22 }
  0x5c   : > { %p2317_p13 = scmp.ne.s32.totalorder %s330_s22, %s2316_s12  ;;  %p2325_p9 = scmp.lt.s32.totalorder %s2316_s12, %s2316_s12 }
  0x5e   : > { %p2319_p0 = pnand %p2317_p13, %p2596_p3  ;;  %p2326_p10 = por %p2325_p9, %p2324_p8 }
  0x60   : > { %p2320_p7 = pneg %p2319_p0 }
  0x62   : > { %p2327_p1 = pnand %p2326_p10, %p2320_p7 }
  0x64   : > { %2330 = shalt.err (!%p2327_p1)
}
  0x65   : > { %1931 = dma.hbm_to_vmem [thread:$0]  (!%p2582_p2), %s3391_s8, 512, %s330_s22, [#allocation10], %s2439_s10, %s2439_s10, %s2440_s9  }
  0x66   : > { %p1631_p4 = scmp.ge.s32.totalorder %s2433_s16, 2 }
  0x67   : > { %s2657_s2 = sand.u32 (!%p1631_p4), 1, %s2429_s15   ;;  %s1745_s28 = sshll.u32 (!%p1631_p4), %s2433_s16, 8 }
  0x68   : > { %342 = sbr.rel (%p1631_p4) target bundleno = 136 (0x88), region = 48  ;;  %s1632_s19 = sshll.u32 (!%p1631_p4), %s2657_s2, 6 }
  0x69   : > { %s2664_s20 = scalar_lea.hbm (!%p1631_p4), %s3383_s0, %s1745_s28  ;;  %s350_s10 = scalar_lea.vmem (!%p1631_p4), [#allocation2], %s1632_s19 }
  0x6a   : > { %s357_s9 = sshll.u32 (!%p1631_p4), %s350_s10, 4  ;;  %s347_s22 = scalar_lea.sflag (!%p1631_p4), [#allocation3], %s2657_s2  ;;  %s2666_s9 = int_to_ptr.vmem [resolvable:$true] %s357_s9 }
  0x6b   : > { %s2331_s21 = scalar_lea.hbm (!%p1631_p4), %s2664_s20, 1024  ;;  %p3437_p3 = scmp.ne.s32.totalorder (!%p1631_p4), %s3427_s23, 0 }
  0x6c   : > { %p2332_p2 = scmp.ne.s32.totalorder (!%p1631_p4), %s2664_s20, %s2331_s21  ;;  %s2335_s29 = scalar_lea.hbm (!%p1631_p4), %s3383_s0, 2048 }
  0x6d   : > { %p2336_p11 = scmp.lt.u32.totalorder (!%p1631_p4), %s2664_s20, %s3383_s0  ;;  %p2337_p12 = scmp.lt.u32.totalorder (!%p1631_p4), %s2335_s29, %s2331_s21 }
  0x6e   : > { %p2333_p6 = pnand (!%p1631_p4), %p2332_p2, %p3437_p3  ;;  %p2339_p0 = scmp.lt.u32.totalorder (!%p1631_p4), %s2331_s21, %s2664_s20 }
  0x6f   : > { %p2338_p13 = por %p2337_p12, %p2336_p11 }
  0x70   : > { %p2334_p5 = pneg %p2333_p6 }
  0x71   : > { %p2340_p7 = por %p2339_p0, %p2338_p13 }
  0x73   : > { %p2341_p8 = pnand %p2340_p7, %p2334_p5 }
  0x75   : > { %2344 = shalt.err (!%p2341_p8)
}
  0x76   : > { %s2345_s25 = scalar_lea.vmem %s2666_s9, 1024  ;;  %s2442_s28 = smov [#allocation2]  }
  0x77   : > { %p2346_p9 = scmp.ne.s32.totalorder %s2666_s9, %s2345_s25  ;;  %s2349_s19 = sshll.u32 %s2442_s28, 4  ;;  %s2350_s19 = int_to_ptr.vmem [resolvable:$false] %s2349_s19 }
  0x78   : > { %s2351_s26 = scalar_lea.vmem %s2350_s19, 2048  ;;  %p2352_p2 = scmp.lt.s32.totalorder %s2666_s9, %s2350_s19 }
  0x79   : > { %p2347_p10 = pnand %p2346_p9, %p3437_p3  ;;  %p2353_p6 = scmp.lt.s32.totalorder %s2351_s26, %s2345_s25 }
  0x7b   : > { %p2348_p1 = pneg %p2347_p10  ;;  %p2354_p11 = por %p2353_p6, %p2352_p2 }
  0x7d   : > { %p2355_p12 = pnand %p2354_p11, %p2348_p1 }
  0x7f   : > { %2358 = shalt.err (!%p2355_p12)
}
  0x80   : > { %s2443_s30 = smov 512   ;;  %s2444_s10 = smov 256  }
  0x81   : > { %s2445_s21 = smov 16   ;;  %366 = sbr.rel (!%p3437_p3) target bundleno = 136 (0x88), region = 56 }
  0x82   : > { %1912 = dma.hbm_to_vmem [thread:$0]  (%p3437_p3), %s2664_s20, 1024, %s2666_s9, %s347_s22, %s2443_s30, %s2444_s10, %s2445_s21  }
  0x83   : > { %s1635_s11 = sshll.u32 (%p3437_p3), %s2657_s2, 5  ;;  %s1746_s18 = sshll.u32 (%p3437_p3), %s2433_s16, 4 }
  0x84   : > { %s373_s13 = scalar_lea.vmem (%p3437_p3), %s3384_s1, %s1746_s18  ;;  %s370_s25 = scalar_lea.vmem (%p3437_p3), [#allocation5], %s1635_s11 }
  0x85   : > { %v386_v0 = vld [vmem:[%s373_s13] sm:$0xff] (%p3437_p3)  ;;  %v388_v1 = vld [vmem:[%s373_s13 + $0x8] sm:$0xff] (%p3437_p3) }
  0x86   : > { %v390_v2 = vld [vmem:[%s373_s13 + $0x20] sm:$0xff] (%p3437_p3)  ;;  %387 = vst [vmem:[%s370_s25] sm:$0xff] (%p3437_p3), %v386_v0  ;;  %389 = vst [vmem:[%s370_s25 + $0x8] sm:$0xff] (%p3437_p3), %v388_v1  ;;  %v392_v3 = vld [vmem:[%s373_s13 + $0x28] sm:$0xff] (%p3437_p3) }
  0x87   : > { %391 = vst [vmem:[%s370_s25 + $0x10] sm:$0xff] (%p3437_p3), %v390_v2  ;;  %393 = vst [vmem:[%s370_s25 + $0x18] sm:$0xff] (%p3437_p3), %v392_v3 }
  0x88 PF: > { %p3438_p3 = scmp.ne.s32.totalorder %s3433_s27, 0 }
  0x89   : > { %s2702_s23 = sand.u32 (!%p3438_p3), 1, %s2425_s14   ;;  %p3439_p5 = scmp.ne.s32.totalorder (!%p3438_p3), %s3428_s24, 0 }
  0x8a   : > { %402 = sbr.rel (%p3438_p3) target bundleno = 1573 (0x625), region = 79  ;;  %s1639_s2 = sshll.u32 (!%p3438_p3), %s2702_s23, 6 }
  0x8b   : > { %s405_s20 = scalar_lea.sflag (!%p3438_p3), [#allocation3], %s2702_s23  ;;  %s408_s9 = scalar_lea.vmem (!%p3438_p3), [#allocation2], %s1639_s2 }
  0x91   : > { %2404 = dma.done.wait (%p3439_p5), %s405_s20, 1024  }
  0x92   : > { %2406 = vsyncadd (%p3439_p5), %s405_s20, 4294966272  ;;  %s1640_s22 = sshll.u32 %s2702_s23, 5  ;;  %p3440_p13 = scmp.eq.s32.totalorder %s2535_s17, 0 }
  0x93   : > { %s2713_s27 = scalar_lea.vmem [#allocation5], %s1640_s22 }
  0x94   : > { %2408 = dma.done.wait (%p3440_p13), [#allocation7], 896   ;;  %p3441_p0 = pmov %p3440_p13 }
  0x96   : > { %2410 = vsyncadd (%p3441_p0), [#allocation7], 4294966400  ;;  %p3442_p7 = pmov %p3441_p0 }
  0x97   : > { %p3443_p8 = pmov %p3441_p0 }
  0x98   : > { %2412 = dma.done.wait (%p3442_p7), [#allocation10], 512  }
  0x99   : > { %2414 = vsyncadd (%p3443_p8), [#allocation10], 4294966784  ;;  %v2446_v4 = vmov 0.0   ;;  %v2447_v5 = vmov 0   ;;  %v625_v6 = vld [vmem:[%s408_s9 + $0x8] sm:$0xff]  ;;  %v627_v7 = vld [vmem:[%s408_s9 + $0x18] sm:$0xff]  ;;  %v471_v36 = vlaneseq }
  0x9a   : > { %731 = vmatprep.mubr.f32.mxu0 %v2446_v4  ;;  %1997 = vset.pattern.permute.xlu0 %v2447_v5  ;;  %v624_v8 = vld [vmem:[%s408_s9] sm:$0xff]  ;;  %v1748_v9 = vpack.c.bf16 %v627_v7, %v625_v6  ;;  %v626_v10 = vld [vmem:[%s408_s9 + $0x10] sm:$0xff]  ;;  %v629_v11 = vld [vmem:[%s408_s9 + $0x28] sm:$0xff]  ;;  %vm657_vm0 = vcmask 261120   ;;  %s2448_s19 = smov 17   ;;  %s2449_s26 = smov 16  }
  0x9b   : > { %2078 = vset.pattern.permute.xlu1 %v2447_v5  ;;  %v631_v12 = vld [vmem:[%s408_s9 + $0x38] sm:$0xff]  ;;  %v1750_v13 = vpack.c.bf16 %v626_v10, %v624_v8  ;;  %v628_v15 = vld [vmem:[%s408_s9 + $0x20] sm:$0xff]  ;;  %v630_v16 = vld [vmem:[%s408_s9 + $0x30] sm:$0xff]  ;;  %v767_v38 = vshrl.u32 %v471_v36, 7  ;;  %s2450_s30 = smov 15   ;;  %s2451_s10 = smov 1  }
  0x9c   : > { %v1752_v14 = vpack.c.bf16 %v631_v12, %v629_v11  ;;  %1749 = vmatprep.subr.bf16.mxu0 %v1748_v9  ;;  %v641_v17 = vld [vmem:[%s3386_s3 + $0x10] sm:$0x1]  ;;  %v1754_v18 = vpack.c.bf16 %v630_v16, %v628_v15  ;;  %v636_v19 = vld [vmem:[#allocation6] sm:$0xff]  ;;  %v637_v20 = vld [vmem:[#allocation6 + $0x8] sm:$0xff]  ;;  %s2452_s21 = smov 127   ;;  %s2453_s11 = smov 113  }
  0x9d   : > { %1751 = vmatpush1.bf16.msra.mxu0 %v1750_v13  ;;  %654 = vperm.xlu0 %1997, %v641_v17   ;;  %v638_v21 = vld [vmem:[#allocation6 + $0x10] sm:$0x1]  ;;  %v768_v39 = vsub.s32 0, %v767_v38  ;;  %v2735_v41 = vld [vmem:[%s2713_s27] sm:$0xff]  ;;  %v2741_v45 = vld [vmem:[%s2713_s27 + $0x8] sm:$0xff]  ;;  %s2454_s18 = smov 112  }
  0x9e   : > { %1753 = vmatprep.subr.bf16.mxu0 %v1752_v14  ;;  %v2738_v42 = vld [vmem:[%s2713_s27 + $0x10] sm:$0xff]  ;;  %v2744_v46 = vld [vmem:[%s2713_s27 + $0x18] sm:$0xff]  ;;  %v779_v56 = vld [vmem:[#allocation8 + $0x8] sm:$0xff]  ;;  %vm3411_vm1 = vcmask 130048   ;;  %s2455_s29 = smov 111   ;;  %v2789_v59 = vand.u32 127, %v471_v36 }
  0x9f   : > { %1678 = vmatprep.mubr.msk.f32.mxu1 %vm3411_vm1, %v779_v56  ;;  %v919_v57 = vld [vmem:[%s3388_s5 + $0x8] sm:$0xff]  ;;  %v918_v58 = vld [vmem:[%s3388_s5] sm:$0xff]  ;;  %s1747_s2 = sshll.u32 %s2535_s17, 8  ;;  %s3561_s9 = sld [smem:[#allocation23_spill]] }
  0xa0   : > { %v473_v60 = vadd.s32 128, %v2789_v59  ;;  %v478_v62 = vand.u32 255, %v2789_v59  ;;  %vm3409_vm7 = vcmp.lt.s32.totalorder %v2789_v59, 17  ;;  %vm3407_vm9 = vcmp.lt.s32.totalorder %v2789_v59, 16  ;;  %s1493_s17 = scalar_lea.sflag [#allocation4], %s2702_s23  ;;  %s2456_s28 = smov [#allocation11]  }
  0xa1   : > { %1755 = vmatpush1.bf16.msra.mxu0 %v1754_v18  ;;  %vm3408_vm15 = vcmp.lt.s32.totalorder %v2789_v59, 15  ;;  %s2363_s12 = sshll.u32 %s2456_s28, 4  ;;  %s2364_s12 = int_to_ptr.vmem [resolvable:$false] %s2363_s12 }
  0xa2   : > { %v2792_v61 = vand.u32 255, %v473_v60  ;;  %v502_v0 = vand.u32 15, %v478_v62  ;;  %v530_v3 = vadd.s32 4294967279, %v478_v62  ;;  %v564_v15 = vadd.s32 4294967281, %v478_v62  ;;  %s2365_s13 = scalar_lea.vmem %s2364_s12, 1024 }
  0xa4   : > { %1645 = vmatmul.mubr.msk.f32.vlgmr.msra.gmra.mrb[0].mxu0 %vm657_vm0, %v636_v19  ;;  %v509_v63 = vand.u32 15, %v2792_v61  ;;  %v2796_v2 = vadd.s32 4294967295, %v502_v0  ;;  %vm532_vm5 = vcmp.ge.s32.totalorder %v530_v3, 0  ;;  %v2811_v14 = vadd.s32 1, %v502_v0 }
  0xa5   : > { %737 = vmatprep.mubr.f32.mxu0 %v2446_v4  ;;  %s3338_s27 = scalar_lea.hbm %s3561_s9, %s1747_s2 }
  0xa6   : > { %v523_v1 = vadd.s32 4294967295, %v509_v63  ;;  %vm524_vm4 = vcmp.ge.s32.totalorder %v2796_v2, 0  ;;  %v557_v13 = vadd.s32 1, %v509_v63 }
  0xa7   : > { %vm2806_vm8 = vmand %vm524_vm4, %vm532_vm5 }
  0xa8   : > { %1646 = vmatmul.mubr.msk.f32.gmra.mrb[2].mxu0 %vm657_vm0, %v637_v20  ;;  %vm525_vm2 = vcmp.ge.s32.totalorder %v523_v1, 0  ;;  %vm527_vm3 = vcmp.lt.s32.totalorder %v523_v1, 16  ;;  %vm2831_vm12 = vmpackc.low %vm2806_vm8, %vm2806_vm8  ;;  %vm559_vm13 = vcmp.ge.s32.totalorder %v557_v13, 0  ;;  %vm561_vm14 = vcmp.lt.s32.totalorder %v557_v13, 16 }
  0xa9   : > { %743 = vmatprep.mubr.f32.mxu0 %v2446_v4  ;;  %v546_v4 = vadd.s32 4294967280, %v478_v62  ;;  %vm2799_vm6 = vmand %vm525_vm2, %vm527_vm3  ;;  %vm566_vm2 = vcmp.ge.s32.totalorder %v564_v15, 0 }
  0xaa   : > { %vm2820_vm11 = vmpackc.low %vm2799_vm6, %vm2799_vm6 }
  0xab   : > { %vm548_vm10 = vcmp.ge.s32.totalorder %v546_v4, 0  ;;  %vm2857_vm5 = vmand %vm559_vm13, %vm561_vm14 }
  0xac   : > { %1647 = vmatmul.mubr.msk.f32.gmra.mrb[4].mxu0 %vm657_vm0, %v638_v21  ;;  %vm560_vm0 = vcmp.lt.s32.totalorder %v2811_v14, 16  ;;  %vm2851_vm3 = vmpackc.low %vm548_vm10, %vm548_vm10  ;;  %vm3410_vm10 = vcmp.lt.s32.totalorder %v2789_v59, 1 }
  0xad   : > { %vm2864_vm8 = vmand %vm560_vm0, %vm566_vm2 }
  0xae   : > { %vm2883_vm13 = vmpackc.low %vm2857_vm5, %vm2857_vm5 }
  0xaf   : > { %vm2890_vm14 = vmpackc.low %vm2864_vm8, %vm2864_vm8 }
 0x11c   : > { %v655_v26 = vpop.permute.xlu0 %654 }
 0x177   : > { %v2726_v22 = vpop.f32.mrb[0].mxu0 }
 0x178   : > { %v2728_v23 = vpop.f32.mrb[1].mxu0 }
 0x17b   : > { %v2730_v24 = vpop.f32.mrb[2].mxu0 }
 0x17c   : > { %v2732_v25 = vpop.f32.mrb[3].mxu0 }
 0x17f   : > { %v745_v27 = vpop.f32.mrb[4].mxu0 }
 0x180   : > { %v746_v28 = vadd.f32 %v745_v27, %v655_v26  ;;  %v747_v29 = vpop.f32.mrb[5].mxu0 }
 0x181   : > { %v748_v30 = vadd.f32 %v747_v29, %v655_v26 }
 0x182   : > { %v1648_v31 = vmul.f32 -1.442695, %v746_v28 }
 0x183   : > { %v1649_v32 = vmul.f32 -1.442695, %v748_v30 }
 0x184   : > { %2239 = vpow2.f32 %v1648_v31 }
 0x185   : > { %2241 = vpow2.f32 %v1649_v32 }
 0x18e   : > { %v2240_v33 = vpop.eup %2239 }
 0x18f   : > { %v2242_v34 = vpop.eup %2241  ;;  %v760_v35 = vadd.f32 1.0, %v2240_v33 }
 0x190   : > { %v761_v37 = vadd.f32 1.0, %v2242_v34  ;;  %v574_v34 = vadd.s32 4294967295, %v478_v62  ;;  %v585_v62 = vadd.s32 1, %v2792_v61 }
 0x191   : > { %2243 = vrcp.f32 %v760_v35 }
 0x192   : > { %2245 = vrcp.f32 %v761_v37 }
 0x19b   : > { %v2244_v40 = vpop.eup %2243 }
 0x19c   : > { %v2246_v43 = vpop.eup %2245  ;;  %v769_v44 = vrot.slane %v2244_v40, %v768_v39 }
 0x19d   : > { %v773_v47 = vrot.slane %v2246_v43, %v768_v39 }
 0x19e   : > { %v2747_v48 = vmul.f32 %v769_v44, %v2735_v41  ;;  %v2750_v49 = vmul.f32 %v769_v44, %v2738_v42 }
 0x19f   : > { %v2753_v50 = vmul.f32 %v773_v47, %v2741_v45  ;;  %v2756_v51 = vmul.f32 %v773_v47, %v2744_v46 }
 0x1a0   : > { %v1998_v52 = vpack.i.bf16 %v2750_v49, %v2747_v48  ;;  %v1781_v55 = vpack.c.bf16 %v2750_v49, %v2747_v48 }
 0x1a1   : > { %v2003_v53 = vpack.i.bf16 %v2756_v51, %v2753_v50  ;;  %v1779_v54 = vpack.c.bf16 %v2756_v51, %v2753_v50  ;;  %v605_v50 = vadd.s32 16, %v2792_v61 }
 0x1a2   : > { %1999 = vrot.lane.b32.xlu0 %v1998_v52, %s2448_s19 }
 0x1a3   : > { %2004 = vrot.lane.b32.xlu1 %v2003_v53, %s2448_s19 }
 0x1a6   : > { %2024 = vrot.lane.b32.xlu0 %v2003_v53, %s2449_s26 }
 0x1a7   : > { %2009 = vrot.lane.b32.xlu1 %v1998_v52, %s2449_s26 }
 0x1aa   : > { %2029 = vrot.lane.b32.xlu0 %v2003_v53, %s2450_s30 }
 0x1ab   : > { %2014 = vrot.lane.b32.xlu1 %v1998_v52, %s2450_s30 }
 0x1ae   : > { %2034 = vrot.lane.b32.xlu0 %v2003_v53, %s2451_s10 }
 0x1af   : > { %2019 = vrot.lane.b32.xlu1 %v1998_v52, %s2451_s10 }
 0x1b2   : > { %2059 = vrot.lane.b32.xlu0 %v2003_v53, %s2452_s21 }
 0x1b3   : > { %2039 = vrot.lane.b32.xlu1 %v1998_v52, %s2452_s21 }
 0x1b6   : > { %2064 = vrot.lane.b32.xlu0 %v2003_v53, %s2453_s11 }
 0x1b7   : > { %2044 = vrot.lane.b32.xlu1 %v1998_v52, %s2453_s11 }
 0x1ba   : > { %2069 = vrot.lane.b32.xlu0 %v2003_v53, %s2454_s18 }
 0x1bb   : > { %2049 = vrot.lane.b32.xlu1 %v1998_v52, %s2454_s18 }
 0x1be   : > { %2074 = vrot.lane.b32.xlu0 %v2003_v53, %s2455_s29 }
 0x1bf   : > { %2054 = vrot.lane.b32.xlu1 %v1998_v52, %s2455_s29 }
 0x1c2   : > { %927 = vperm.xlu0 %1997, %v919_v57  }
 0x1c3   : > { %922 = vperm.xlu1 %2078, %v918_v58  }
 0x214   : > { %v2000_v5 = vpop.permute.xlu0 %1999 }
 0x215   : > { %v2002_v6 = vunpack.i.h.bf16 %v2000_v5  ;;  %v2001_v7 = vunpack.i.l.bf16 %v2000_v5  ;;  %v2005_v8 = vpop.permute.xlu1 %2004 }
 0x216   : > { %v2007_v10 = vunpack.i.h.bf16 %v2005_v8  ;;  %v2006_v11 = vunpack.i.l.bf16 %v2005_v8 }
 0x218   : > { %v2025_v16 = vpop.permute.xlu0 %2024  ;;  %v791_v17 = vsel %vm3409_vm7, %v2001_v7, %v2006_v11  ;;  %v792_v18 = vsel %vm3409_vm7, %v2002_v6, %v2007_v10  ;;  %v793_v20 = vsel %vm3409_vm7, %v2006_v11, %v2001_v7  ;;  %v794_v21 = vsel %vm3409_vm7, %v2007_v10, %v2002_v6 }
 0x219   : > { %v2027_v26 = vunpack.i.h.bf16 %v2025_v16  ;;  %v2026_v27 = vunpack.i.l.bf16 %v2025_v16  ;;  %v2010_v28 = vpop.permute.xlu1 %2009  ;;  %v1756_v29 = vpack.c.bf16 %v792_v18, %v791_v17  ;;  %v1759_v30 = vpack.c.bf16 %v794_v21, %v793_v20 }
 0x21a   : > { %v2012_v32 = vunpack.i.h.bf16 %v2010_v28  ;;  %v2011_v33 = vunpack.i.l.bf16 %v2010_v28  ;;  %vm589_vm7 = vcmp.lt.s32.totalorder %v585_v62, 256  ;;  %v595_v17 = vadd.s32 15, %v2792_v61 }
 0x21b   : > { %1758 = vmatprep.subr.msk.bf16.mxu1 %vm2820_vm11, %v1756_v29  ;;  %vm593_vm8 = vmand %vm2857_vm5, %vm589_vm7 }
 0x21c   : > { %v810_v35 = vsel %vm3407_vm9, %v2026_v27, %v2011_v33  ;;  %v811_v36 = vsel %vm3407_vm9, %v2027_v26, %v2012_v32  ;;  %v2030_v37 = vpop.permute.xlu0 %2029  ;;  %1761 = vmatpush1.bf16.msk.msra.mxu1 %vm2831_vm12, %v1759_v30  ;;  %v808_v38 = vsel %vm3407_vm9, %v2011_v33, %v2026_v27  ;;  %v809_v39 = vsel %vm3407_vm9, %v2012_v32, %v2027_v26  ;;  %vm2937_vm7 = vmpackc.low %vm593_vm8, %vm593_vm8 }
 0x21d   : > { %v1764_v43 = vpack.c.bf16 %v811_v36, %v810_v35  ;;  %v2032_v44 = vunpack.i.h.bf16 %v2030_v37  ;;  %v2031_v47 = vunpack.i.l.bf16 %v2030_v37  ;;  %v2015_v52 = vpop.permute.xlu1 %2014  ;;  %v1762_v53 = vpack.c.bf16 %v809_v39, %v808_v38 }
 0x21e   : > { %v2017_v57 = vunpack.i.h.bf16 %v2015_v52  ;;  %v2016_v58 = vunpack.i.l.bf16 %v2015_v52  ;;  %vm576_vm9 = vcmp.ge.s32.totalorder %v574_v34, 0  ;;  %v3464_v34 = vmov 0 }
 0x21f   : > { %1763 = vmatprep.subr.bf16.mxu1 %v1762_v53  ;;  %vm2897_vm2 = vmand %vm524_vm4, %vm576_vm9  ;;  %vm3414_vm8 = vcmp.lt.s32.totalorder %v2789_v59, 112 }
 0x220   : > { %v825_v63 = vsel %vm3408_vm15, %v2016_v58, %v2031_v47  ;;  %v826_v0 = vsel %vm3408_vm15, %v2017_v57, %v2032_v44  ;;  %v827_v1 = vsel %vm3408_vm15, %v2031_v47, %v2016_v58  ;;  %v828_v3 = vsel %vm3408_vm15, %v2032_v44, %v2017_v57  ;;  %v2035_v4 = vpop.permute.xlu0 %2034  ;;  %1766 = vmatpush1.bf16.msk.msra.mxu1 %vm2851_vm3, %v1764_v43  ;;  %vm2918_vm9 = vmpackc.low %vm2897_vm2, %vm2897_vm2 }
 0x221   : > { %v1767_v6 = vpack.c.bf16 %v826_v0, %v825_v63  ;;  %v1770_v7 = vpack.c.bf16 %v828_v3, %v827_v1  ;;  %v2037_v8 = vunpack.i.h.bf16 %v2035_v4  ;;  %v2036_v10 = vunpack.i.l.bf16 %v2035_v4  ;;  %v2020_v11 = vpop.permute.xlu1 %2019 }
 0x222   : > { %v2022_v13 = vunpack.i.h.bf16 %v2020_v11  ;;  %v2021_v15 = vunpack.i.l.bf16 %v2020_v11  ;;  %vm3412_vm15 = vcmp.lt.s32.totalorder %v2789_v59, 127  ;;  %v3465_v34 = vsel %vm2918_vm9, 4294967295, %v3464_v34 }
 0x223   : > { %1769 = vmatprep.subr.msk.bf16.mxu1 %vm2883_vm13, %v1767_v6  ;;  %vm599_vm2 = vcmp.lt.s32.totalorder %v595_v17, 256  ;;  %v3466_v57 = vmov 0  ;;  %v615_v1 = vadd.s32 17, %v2792_v61 }
 0x224   : > { %v842_v18 = vsel %vm3410_vm10, %v2021_v15, %v2036_v10  ;;  %v843_v20 = vsel %vm3410_vm10, %v2022_v13, %v2037_v8  ;;  %v844_v21 = vsel %vm3410_vm10, %v2036_v10, %v2021_v15  ;;  %v845_v26 = vsel %vm3410_vm10, %v2037_v8, %v2022_v13  ;;  %v2060_v27 = vpop.permute.xlu0 %2059  ;;  %1772 = vmatpush1.bf16.msk.msra.mxu1 %vm2890_vm14, %v1770_v7  ;;  %vm2947_vm1 = vmand %vm2799_vm6, %vm599_vm2 }
 0x225   : > { %v1773_v28 = vpack.c.bf16 %v843_v20, %v842_v18  ;;  %v1776_v29 = vpack.c.bf16 %v845_v26, %v844_v21  ;;  %v2062_v30 = vunpack.i.h.bf16 %v2060_v27  ;;  %v2061_v32 = vunpack.i.l.bf16 %v2060_v27  ;;  %v2040_v33 = vpop.permute.xlu1 %2039  ;;  %vm2963_vm6 = vmpackc.low %vm560_vm0, %vm560_vm0  ;;  %v1257_v18 = vld [vmem:[#allocation9] sm:$0xff]  ;;  %v1260_v27 = vld [vmem:[#allocation9 + $0x18] sm:$0xff] }
 0x226   : > { %v2042_v35 = vunpack.i.h.bf16 %v2040_v33  ;;  %v2041_v36 = vunpack.i.l.bf16 %v2040_v33  ;;  %vm3413_vm10 = vcmp.lt.s32.totalorder %v2789_v59, 113  ;;  %v3467_v57 = vsel %vm2937_vm7, 4294967295, %v3466_v57  ;;  %vm2973_vm2 = vmpackc.low %vm2947_vm1, %vm2947_vm1 }
 0x227   : > { %1775 = vmatprep.subr.msk.bf16.mxu1 %vm2820_vm11, %v1773_v28  ;;  %vm609_vm0 = vcmp.lt.s32.totalorder %v605_v50, 256  ;;  %vm619_vm1 = vcmp.lt.s32.totalorder %v615_v1, 256 }
 0x228   : > { %v861_v37 = vsel %vm3412_vm15, %v2061_v32, %v2041_v36  ;;  %v862_v38 = vsel %vm3412_vm15, %v2062_v30, %v2042_v35  ;;  %v2065_v39 = vpop.permute.xlu0 %2064  ;;  %1778 = vmatpush1.bf16.msk.msra.mxu1 %vm2918_vm9, %v1776_v29  ;;  %v859_v58 = vsel %vm3412_vm15, %v2041_v36, %v2061_v32  ;;  %v860_v60 = vsel %vm3412_vm15, %v2042_v35, %v2062_v30 }
 0x229   : > { %v2067_v43 = vunpack.i.h.bf16 %v2065_v39  ;;  %v2066_v44 = vunpack.i.l.bf16 %v2065_v39  ;;  %v2045_v47 = vpop.permute.xlu1 %2044  ;;  %1780 = vmatprep.subr.bf16.mxu1 %v1779_v54  ;;  %v1783_v62 = vpack.c.bf16 %v862_v38, %v861_v37  ;;  %v1786_v7 = vpack.c.bf16 %v860_v60, %v859_v58  ;;  %v778_v39 = vld [vmem:[#allocation8] sm:$0xff] }
 0x22a   : > { %v2047_v52 = vunpack.i.h.bf16 %v2045_v47  ;;  %v2046_v53 = vunpack.i.l.bf16 %v2045_v47  ;;  %vm3478_vm15 = vcmp.lt.s32.totalorder %v2789_v59, 112 }
 0x22c   : > { %v878_v51 = vsel %vm3413_vm10, %v2066_v44, %v2046_v53  ;;  %v879_v54 = vsel %vm3413_vm10, %v2067_v43, %v2047_v52  ;;  %v2070_v0 = vpop.permute.xlu0 %2069  ;;  %1782 = vmatpush1.bf16.msra.mxu1 %v1781_v55  ;;  %v3472_v55 = vmov 0  ;;  %v876_v61 = vsel %vm3413_vm10, %v2046_v53, %v2066_v44  ;;  %v780_v44 = vld [vmem:[#allocation8 + $0x10] sm:$0xff] }
 0x22d   : > { %v2072_v3 = vunpack.i.h.bf16 %v2070_v0  ;;  %v2071_v4 = vunpack.i.l.bf16 %v2070_v0  ;;  %v2050_v6 = vpop.permute.xlu1 %2049  ;;  %1785 = vmatprep.subr.msk.bf16.mxu1 %vm2937_vm7, %v1783_v62  ;;  %v3473_v55 = vsel %vm2973_vm2, 4294967295, %v3472_v55  ;;  %v877_v14 = vsel %vm3413_vm10, %v2047_v52, %v2067_v43  ;;  %vm2993_vm10 = vmpackc.low %vm524_vm4, %vm524_vm4  ;;  %v781_v43 = vld [vmem:[#allocation8 + $0x18] sm:$0xff] }
 0x22e   : > { %v2052_v48 = vunpack.i.h.bf16 %v2050_v6  ;;  %v2051_v49 = vunpack.i.l.bf16 %v2050_v6  ;;  %v1789_v8 = vpack.c.bf16 %v879_v54, %v878_v51  ;;  %v1792_v20 = vpack.c.bf16 %v877_v14, %v876_v61  ;;  %vm623_vm4 = vmand %vm2857_vm5, %vm619_vm1 }
 0x22f   : > { %vm3480_vm7 = vcmp.lt.s32.totalorder %v2789_v59, 111 }
 0x230   : > { %v895_v10 = vsel %vm3414_vm8, %v2071_v4, %v2051_v49  ;;  %v896_v11 = vsel %vm3414_vm8, %v2072_v3, %v2052_v48  ;;  %v2075_v13 = vpop.permute.xlu0 %2074  ;;  %1788 = vmatpush1.bf16.msk.msra.mxu1 %vm2963_vm6, %v1786_v7  ;;  %vm2997_vm8 = vmpackc.low %vm609_vm0, %vm609_vm0  ;;  %v893_v29 = vsel %vm3478_vm15, %v2051_v49, %v2071_v4  ;;  %vm3488_vm0 = vcmp.lt.s32.totalorder %v2789_v59, 17 }
 0x231   : > { %v2077_v15 = vunpack.i.h.bf16 %v2075_v13  ;;  %v2076_v16 = vunpack.i.l.bf16 %v2075_v13  ;;  %v2055_v17 = vpop.permute.xlu1 %2054  ;;  %1791 = vmatprep.subr.msk.bf16.mxu1 %vm2973_vm2, %v1789_v8  ;;  %v1795_v28 = vpack.c.bf16 %v896_v11, %v895_v10  ;;  %vm3479_vm2 = vmmov %vm3478_vm15  ;;  %v640_v8 = vld [vmem:[%s3386_s3 + $0x8] sm:$0xff]  ;;  %v1154_v10 = vld [vmem:[%s3390_s7] sm:$0xff] }
 0x232   : > { %v2057_v21 = vunpack.i.h.bf16 %v2055_v17  ;;  %v2056_v26 = vunpack.i.l.bf16 %v2055_v17  ;;  %v894_v30 = vsel %vm3479_vm2, %v2052_v48, %v2072_v3  ;;  %vm3481_vm9 = vmmov %vm3480_vm7  ;;  %v1155_v11 = vld [vmem:[%s3390_s7 + $0x8] sm:$0xff] }
 0x233   : > { %v1798_v33 = vpack.c.bf16 %v894_v30, %v893_v29  ;;  %vm3015_vm15 = vmpackc.low %vm623_vm4, %vm623_vm4 }
 0x234   : > { %v912_v2 = vsel %vm3480_vm7, %v2076_v16, %v2056_v26  ;;  %v913_v32 = vsel %vm3481_vm9, %v2077_v15, %v2057_v21  ;;  %1794 = vmatpush1.bf16.msk.msra.mxu1 %vm2993_vm10, %v1792_v20  ;;  %vm3484_vm2 = vmmov %vm3480_vm7  ;;  %vm3486_vm9 = vcmask 130048  }
 0x235   : > { %1797 = vmatprep.subr.msk.bf16.mxu1 %vm2997_vm8, %v1795_v28  ;;  %v910_v56 = vsel %vm3484_vm2, %v2056_v26, %v2076_v16  ;;  %vm3485_vm5 = vmmov %vm3484_vm2  ;;  %v1800_v37 = vpack.c.bf16 %v913_v32, %v912_v2 }
 0x236   : > { %v911_v36 = vsel %vm3485_vm5, %v2057_v21, %v2077_v15  ;;  %vm3487_vm7 = vmmov %vm3486_vm9  ;;  %vm3492_vm5 = vcmp.lt.s32.totalorder %v2789_v59, 16 }
 0x237   : > { %v1803_v38 = vpack.c.bf16 %v911_v36, %v910_v56  ;;  %vm3489_vm1 = vmmov %vm3488_vm0 }
 0x238   : > { %1799 = vmatpush1.bf16.msra.mxu1 %v1798_v33  ;;  %vm3490_vm4 = vmmov %vm3488_vm0 }
 0x239   : > { %1802 = vmatprep.subr.msk.bf16.mxu1 %vm3015_vm15, %v1800_v37  ;;  %vm3491_vm2 = vmmov %vm3488_vm0 }
 0x23c   : > { %1805 = vmatpush1.bf16.msk.msra.mxu1 %vm2963_vm6, %v1803_v38 }
 0x23f   : > { %1002 = vmatmul.mubr.f32.vlgmr.msra.gmra.mrb[0].mxu1 %v778_v39 }
 0x240   : > { %1679 = vmatprep.mubr.msk.f32.mxu1 %vm3486_vm9, %v781_v43  ;;  %vm3493_vm9 = vmmov %vm3492_vm5 }
 0x241   : > { %v928_v62 = vpop.permute.xlu0 %927 }
 0x242   : > { %v923_v47 = vpop.permute.xlu1 %922 }
 0x243   : > { %1008 = vmatmul.mubr.f32.gmra.mrb[2].mxu1 %v780_v44 }
 0x312   : > { %v1003_v52 = vpop.f32.mrb[0].mxu1 }
 0x313   : > { %v1004_v53 = vadd.f32 %v1003_v52, %v923_v47  ;;  %v1005_v58 = vpop.f32.mrb[1].mxu1 }
 0x314   : > { %v1006_v60 = vadd.f32 %v1005_v58, %v923_v47 }
 0x315   : > { %v1014_v50 = vmax.f32 %v1004_v53, 0.0 }
 0x316   : > { %v1009_v63 = vpop.f32.mrb[2].mxu1  ;;  %v1015_v0 = vmax.f32 %v1006_v60, 0.0 }
 0x317   : > { %v1010_v51 = vadd.f32 %v1009_v63, %v928_v62  ;;  %v1011_v54 = vpop.f32.mrb[3].mxu1  ;;  %v3029_v6 = vadd.f32 %v1014_v50, %v2735_v41 }
 0x318   : > { %v1012_v1 = vadd.f32 %v1011_v54, %v928_v62  ;;  %v3035_v48 = vadd.f32 %v1015_v0, %v2741_v45  ;;  %v1023_v45 = vld [vmem:[%s3389_s6 + $0x8] sm:$0xff] }
 0x319   : > { %v1016_v3 = vmax.f32 %v1010_v51, 0.0  ;;  %1708 = vmatprep.mubr.msk.f32.mxu0 %vm3487_vm7, %v1023_v45  ;;  %vm3494_vm7 = vmmov %vm3492_vm5 }
 0x31a   : > { %v1017_v4 = vmax.f32 %v1012_v1, 0.0 }
 0x31b   : > { %v3032_v7 = vadd.f32 %v1016_v3, %v2738_v42 }
 0x31c   : > { %v3038_v49 = vadd.f32 %v1017_v4, %v2744_v46  ;;  %v639_v46 = vld [vmem:[%s3386_s3] sm:$0xff] }
 0x31d   : > { %v2079_v61 = vpack.i.bf16 %v3032_v7, %v3029_v6  ;;  %v1831_v42 = vpack.c.bf16 %v3032_v7, %v3029_v6 }
 0x31e   : > { %v2099_v14 = vpack.i.bf16 %v3038_v49, %v3035_v48  ;;  %v1829_v41 = vpack.c.bf16 %v3038_v49, %v3035_v48 }
 0x31f   : > { %2080 = vrot.lane.b32.xlu1 %v2079_v61, %s2448_s19 }
 0x320   : > { %2100 = vrot.lane.b32.xlu0 %v2099_v14, %s2448_s19 }
 0x323   : > { %2085 = vrot.lane.b32.xlu1 %v2079_v61, %s2449_s26 }
 0x324   : > { %2105 = vrot.lane.b32.xlu0 %v2099_v14, %s2449_s26 }
 0x327   : > { %2090 = vrot.lane.b32.xlu1 %v2079_v61, %s2450_s30 }
 0x328   : > { %2110 = vrot.lane.b32.xlu0 %v2099_v14, %s2450_s30 }
 0x32b   : > { %2095 = vrot.lane.b32.xlu1 %v2079_v61, %s2451_s10 }
 0x32c   : > { %2115 = vrot.lane.b32.xlu0 %v2099_v14, %s2451_s10 }
 0x32f   : > { %2120 = vrot.lane.b32.xlu1 %v2079_v61, %s2452_s21 }
 0x330   : > { %2140 = vrot.lane.b32.xlu0 %v2099_v14, %s2452_s21 }
 0x333   : > { %2125 = vrot.lane.b32.xlu1 %v2079_v61, %s2453_s11 }
 0x334   : > { %2145 = vrot.lane.b32.xlu0 %v2099_v14, %s2453_s11 }
 0x337   : > { %2130 = vrot.lane.b32.xlu1 %v2079_v61, %s2454_s18 }
 0x338   : > { %2150 = vrot.lane.b32.xlu0 %v2099_v14, %s2454_s18 }
 0x33b   : > { %2135 = vrot.lane.b32.xlu1 %v2079_v61, %s2455_s29 }
 0x33c   : > { %2155 = vrot.lane.b32.xlu0 %v2099_v14, %s2455_s29 }
 0x33f   : > { %644 = vperm.xlu1 %2078, %v639_v46  }
 0x340   : > { %649 = vperm.xlu0 %1997, %v640_v8  }
 0x343   : > { %1158 = vperm.xlu1 %2078, %v1154_v10  }
 0x344   : > { %1163 = vperm.xlu0 %1997, %v1155_v11  }
 0x391   : > { %v2081_v13 = vpop.permute.xlu1 %2080 }
 0x392   : > { %v2083_v15 = vunpack.i.h.bf16 %v2081_v13  ;;  %v2082_v16 = vunpack.i.l.bf16 %v2081_v13  ;;  %v2101_v17 = vpop.permute.xlu0 %2100 }
 0x393   : > { %v2103_v20 = vunpack.i.h.bf16 %v2101_v17  ;;  %v2102_v21 = vunpack.i.l.bf16 %v2101_v17 }
 0x395   : > { %v1034_v26 = vsel %vm3488_vm0, %v2082_v16, %v2102_v21  ;;  %v1035_v28 = vsel %vm3489_vm1, %v2083_v15, %v2103_v20  ;;  %v1036_v29 = vsel %vm3490_vm4, %v2102_v21, %v2082_v16  ;;  %v1037_v30 = vsel %vm3491_vm2, %v2103_v20, %v2083_v15  ;;  %v2086_v2 = vpop.permute.xlu1 %2085  ;;  %vm3495_vm0 = vmmov %vm3492_vm5 }
 0x396   : > { %v1806_v32 = vpack.c.bf16 %v1035_v28, %v1034_v26  ;;  %v1809_v33 = vpack.c.bf16 %v1037_v30, %v1036_v29  ;;  %v2088_v56 = vunpack.i.h.bf16 %v2086_v2  ;;  %v2087_v36 = vunpack.i.l.bf16 %v2086_v2  ;;  %v2106_v37 = vpop.permute.xlu0 %2105 }
 0x397   : > { %v2108_v38 = vunpack.i.h.bf16 %v2106_v37  ;;  %v2107_v39 = vunpack.i.l.bf16 %v2106_v37  ;;  %vm3496_vm1 = vcmp.lt.s32.totalorder %v2789_v59, 15 }
 0x398   : > { %1808 = vmatprep.subr.msk.bf16.mxu0 %vm2820_vm11, %v1806_v32  ;;  %vm3497_vm4 = vmmov %vm3496_vm1 }
 0x399   : > { %v1052_v43 = vsel %vm3492_vm5, %v2107_v39, %v2087_v36  ;;  %v1053_v44 = vsel %vm3493_vm9, %v2108_v38, %v2088_v56  ;;  %v2091_v47 = vpop.permute.xlu1 %2090  ;;  %1811 = vmatpush1.bf16.msk.msra.mxu0 %vm2831_vm12, %v1809_v33  ;;  %v1050_v52 = vsel %vm3494_vm7, %v2087_v36, %v2107_v39  ;;  %v1051_v53 = vsel %vm3495_vm0, %v2088_v56, %v2108_v38  ;;  %vm3498_vm2 = vmmov %vm3496_vm1 }
 0x39a   : > { %v1814_v58 = vpack.c.bf16 %v1053_v44, %v1052_v43  ;;  %v2093_v60 = vunpack.i.h.bf16 %v2091_v47  ;;  %v2092_v62 = vunpack.i.l.bf16 %v2091_v47  ;;  %v2111_v63 = vpop.permute.xlu0 %2110  ;;  %v1812_v50 = vpack.c.bf16 %v1051_v53, %v1050_v52  ;;  %vm3499_vm5 = vmmov %vm3496_vm1 }
 0x39b   : > { %v2113_v51 = vunpack.i.h.bf16 %v2111_v63  ;;  %v2112_v54 = vunpack.i.l.bf16 %v2111_v63  ;;  %vm3500_vm9 = vcmp.lt.s32.totalorder %v2789_v59, 1 }
 0x39c   : > { %1813 = vmatprep.subr.bf16.mxu0 %v1812_v50  ;;  %vm3501_vm7 = vmmov %vm3500_vm9 }
 0x39d   : > { %v1066_v0 = vsel %vm3496_vm1, %v2092_v62, %v2112_v54  ;;  %v1067_v1 = vsel %vm3497_vm4, %v2093_v60, %v2113_v51  ;;  %v1068_v3 = vsel %vm3498_vm2, %v2112_v54, %v2092_v62  ;;  %v1069_v4 = vsel %vm3499_vm5, %v2113_v51, %v2093_v60  ;;  %v2096_v61 = vpop.permute.xlu1 %2095  ;;  %1816 = vmatpush1.bf16.msk.msra.mxu0 %vm2851_vm3, %v1814_v58  ;;  %vm3502_vm0 = vmmov %vm3501_vm7 }
 0x39e   : > { %v1817_v14 = vpack.c.bf16 %v1067_v1, %v1066_v0  ;;  %v1820_v45 = vpack.c.bf16 %v1069_v4, %v1068_v3  ;;  %v2098_v46 = vunpack.i.h.bf16 %v2096_v61  ;;  %v2097_v8 = vunpack.i.l.bf16 %v2096_v61  ;;  %v2116_v10 = vpop.permute.xlu0 %2115  ;;  %vm3503_vm1 = vmmov %vm3502_vm0 }
 0x39f   : > { %v2118_v11 = vunpack.i.h.bf16 %v2116_v10  ;;  %v2117_v13 = vunpack.i.l.bf16 %v2116_v10  ;;  %vm3504_vm4 = vcmp.lt.s32.totalorder %v2789_v59, 127  ;;  %vm3506_vm5 = vnez %v3465_v34 }
 0x3a0   : > { %1819 = vmatprep.subr.msk.bf16.mxu0 %vm2883_vm13, %v1817_v14  ;;  %vm3505_vm2 = vmmov %vm3504_vm4 }
 0x3a1   : > { %v1082_v15 = vsel %vm3500_vm9, %v2097_v8, %v2117_v13  ;;  %v1083_v16 = vsel %vm3501_vm7, %v2098_v46, %v2118_v11  ;;  %v1084_v17 = vsel %vm3502_vm0, %v2117_v13, %v2097_v8  ;;  %v1085_v20 = vsel %vm3503_vm1, %v2118_v11, %v2098_v46  ;;  %v2121_v21 = vpop.permute.xlu1 %2120  ;;  %1822 = vmatpush1.bf16.msk.msra.mxu0 %vm2890_vm14, %v1820_v45  ;;  %vm3507_vm9 = vmmov %vm3505_vm2 }
 0x3a2   : > { %v1823_v26 = vpack.c.bf16 %v1083_v16, %v1082_v15  ;;  %v1826_v28 = vpack.c.bf16 %v1085_v20, %v1084_v17  ;;  %v2123_v29 = vunpack.i.h.bf16 %v2121_v21  ;;  %v2122_v30 = vunpack.i.l.bf16 %v2121_v21  ;;  %v2141_v2 = vpop.permute.xlu0 %2140  ;;  %vm3508_vm7 = vmmov %vm3505_vm2 }
 0x3a3   : > { %v2143_v32 = vunpack.i.h.bf16 %v2141_v2  ;;  %v2142_v33 = vunpack.i.l.bf16 %v2141_v2  ;;  %vm3509_vm0 = vcmp.lt.s32.totalorder %v2789_v59, 113  ;;  %v1024_v2 = vld [vmem:[%s3389_s6 + $0x10] sm:$0xff] }
 0x3a4   : > { %1825 = vmatprep.subr.msk.bf16.mxu0 %vm2820_vm11, %v1823_v26  ;;  %vm3510_vm1 = vmmov %vm3509_vm0 }
 0x3a5   : > { %v1100_v56 = vsel %vm3504_vm4, %v2142_v33, %v2122_v30  ;;  %v1101_v36 = vsel %vm3505_vm2, %v2143_v32, %v2123_v29  ;;  %v2126_v37 = vpop.permute.xlu1 %2125  ;;  %1828 = vmatpush1.bf16.msk.msra.mxu0 %vm3506_vm5, %v1826_v28  ;;  %v1098_v52 = vsel %vm3507_vm9, %v2122_v30, %v2142_v33  ;;  %v1099_v53 = vsel %vm3508_vm7, %v2123_v29, %v2143_v32  ;;  %vm3512_vm2 = vmmov %vm3509_vm0  ;;  %v1022_v29 = vld [vmem:[%s3389_s6] sm:$0xff]  ;;  %v1025_v30 = vld [vmem:[%s3389_s6 + $0x18] sm:$0xff] }
 0x3a6   : > { %v2128_v38 = vunpack.i.h.bf16 %v2126_v37  ;;  %v2127_v39 = vunpack.i.l.bf16 %v2126_v37  ;;  %v2146_v43 = vpop.permute.xlu0 %2145  ;;  %1830 = vmatprep.subr.bf16.mxu0 %v1829_v41  ;;  %v1833_v58 = vpack.c.bf16 %v1101_v36, %v1100_v56  ;;  %vm3511_vm4 = vnez %v3467_v57  ;;  %vm3513_vm9 = vmmov %vm3509_vm0 }
 0x3a7   : > { %v2148_v44 = vunpack.i.h.bf16 %v2146_v43  ;;  %v2147_v47 = vunpack.i.l.bf16 %v2146_v43  ;;  %v1836_v50 = vpack.c.bf16 %v1099_v53, %v1098_v52  ;;  %vm3514_vm7 = vcmp.lt.s32.totalorder %v2789_v59, 112 }
 0x3a9   : > { %v1116_v60 = vsel %vm3509_vm0, %v2147_v47, %v2127_v39  ;;  %v1117_v62 = vsel %vm3510_vm1, %v2148_v44, %v2128_v38  ;;  %v2131_v63 = vpop.permute.xlu1 %2130  ;;  %1832 = vmatpush1.bf16.msra.mxu0 %v1831_v42  ;;  %v1114_v0 = vsel %vm3512_vm2, %v2127_v39, %v2147_v47  ;;  %v1115_v1 = vsel %vm3513_vm9, %v2128_v38, %v2148_v44  ;;  %vm3515_vm0 = vmmov %vm3514_vm7 }
 0x3aa   : > { %v2133_v48 = vunpack.i.h.bf16 %v2131_v63  ;;  %v2132_v49 = vunpack.i.l.bf16 %v2131_v63  ;;  %v2151_v41 = vpop.permute.xlu0 %2150  ;;  %1835 = vmatprep.subr.msk.bf16.mxu0 %vm3511_vm4, %v1833_v58  ;;  %v1839_v3 = vpack.c.bf16 %v1117_v62, %v1116_v60  ;;  %vm3516_vm1 = vnez %v3473_v55  ;;  %vm3517_vm2 = vmmov %vm3515_vm0 }
 0x3ab   : > { %v2153_v51 = vunpack.i.h.bf16 %v2151_v41  ;;  %v2152_v54 = vunpack.i.l.bf16 %v2151_v41  ;;  %v1842_v45 = vpack.c.bf16 %v1115_v1, %v1114_v0  ;;  %vm3518_vm9 = vmmov %vm3515_vm0 }
 0x3ad   : > { %v1132_v6 = vsel %vm3514_vm7, %v2152_v54, %v2132_v49  ;;  %v1133_v7 = vsel %vm3515_vm0, %v2153_v51, %v2133_v48  ;;  %v2136_v42 = vpop.permute.xlu1 %2135  ;;  %1838 = vmatpush1.bf16.msk.msra.mxu0 %vm2963_vm6, %v1836_v50  ;;  %v1130_v10 = vsel %vm3517_vm2, %v2132_v49, %v2152_v54  ;;  %v1131_v11 = vsel %vm3518_vm9, %v2133_v48, %v2153_v51 }
 0x3ae   : > { %v2138_v4 = vunpack.i.h.bf16 %v2136_v42  ;;  %v2137_v61 = vunpack.i.l.bf16 %v2136_v42  ;;  %v2156_v14 = vpop.permute.xlu0 %2155  ;;  %1841 = vmatprep.subr.msk.bf16.mxu0 %vm3516_vm1, %v1839_v3  ;;  %v1845_v13 = vpack.c.bf16 %v1133_v7, %v1132_v6  ;;  %vm3519_vm7 = vcmp.lt.s32.totalorder %v2789_v59, 111 }
 0x3af   : > { %v2158_v46 = vunpack.i.h.bf16 %v2156_v14  ;;  %v2157_v8 = vunpack.i.l.bf16 %v2156_v14  ;;  %vm3520_vm0 = vmmov %vm3519_vm7  ;;  %v1848_v17 = vpack.c.bf16 %v1131_v11, %v1130_v10 }
 0x3b0   : > { %vm3521_vm1 = vmmov %vm3520_vm0 }
 0x3b1   : > { %v1148_v15 = vsel %vm3519_vm7, %v2157_v8, %v2137_v61  ;;  %v1149_v16 = vsel %vm3520_vm0, %v2158_v46, %v2138_v4  ;;  %1844 = vmatpush1.bf16.msk.msra.mxu0 %vm2993_vm10, %v1842_v45  ;;  %v1146_v20 = vsel %vm3521_vm1, %v2137_v61, %v2157_v8  ;;  %vm3522_vm2 = vmmov %vm3520_vm0  ;;  %vm3523_vm1 = vcmask 130048  }
 0x3b2   : > { %1847 = vmatprep.subr.msk.bf16.mxu0 %vm2997_vm8, %v1845_v13  ;;  %v1147_v21 = vsel %vm3522_vm2, %v2138_v4, %v2158_v46  ;;  %v1850_v26 = vpack.c.bf16 %v1149_v16, %v1148_v15  ;;  %v1258_v4 = vld [vmem:[#allocation9 + $0x8] sm:$0xff]  ;;  %vm3524_vm9 = vmmov %vm3523_vm1  ;;  %vm3526_vm7 = vcmp.lt.s32.totalorder %v2789_v59, 17 }
 0x3b3   : > { %v1853_v28 = vpack.c.bf16 %v1147_v21, %v1146_v20  ;;  %1738 = vmatprep.mubr.msk.f32.mxu1 %vm3524_vm9, %v1258_v4  ;;  %vm3527_vm0 = vmmov %vm3526_vm7  ;;  %vm3530_vm9 = vcmp.lt.s32.totalorder %v2789_v59, 16 }
 0x3b4   : > { %vm3528_vm2 = vmmov %vm3527_vm0 }
 0x3b5   : > { %1849 = vmatpush1.bf16.msra.mxu0 %v1848_v17 }
 0x3b6   : > { %1852 = vmatprep.subr.msk.bf16.mxu0 %vm3015_vm15, %v1850_v26 }
 0x3b9   : > { %1855 = vmatpush1.bf16.msk.msra.mxu0 %vm2963_vm6, %v1853_v28 }
 0x3bc   : > { %1237 = vmatmul.mubr.f32.vlgmr.msra.gmra.mrb[6].mxu0 %v1022_v29 }
 0x3bd   : > { %1709 = vmatprep.mubr.msk.f32.mxu0 %vm3523_vm1, %v1025_v30  ;;  %vm3529_vm1 = vmmov %vm3527_vm0 }
 0x3be   : > { %v645_v32 = vpop.permute.xlu1 %644 }
 0x3bf   : > { %v650_v33 = vpop.permute.xlu0 %649  ;;  %v734_v56 = vadd.f32 %v2726_v22, %v645_v32  ;;  %v736_v36 = vadd.f32 %v2728_v23, %v645_v32 }
 0x3c0   : > { %1243 = vmatmul.mubr.f32.gmra.mrb[8].mxu0 %v1024_v2  ;;  %v740_v52 = vadd.f32 %v2730_v24, %v650_v33  ;;  %v742_v60 = vadd.f32 %v2732_v25, %v650_v33 }
 0x3c1   : > { %v750_v47 = vmax.f32 %v734_v56, 0.0  ;;  %v751_v58 = vmax.f32 %v736_v36, 0.0 }
 0x3c2   : > { %v1159_v37 = vpop.permute.xlu1 %1158  ;;  %v752_v51 = vmax.f32 %v740_v52, 0.0  ;;  %v753_v0 = vmax.f32 %v742_v60, 0.0 }
 0x3c3   : > { %v1164_v62 = vpop.permute.xlu0 %1163 }
 0x48f   : > { %v1238_v38 = vpop.f32.mrb[6].mxu0 }
 0x490   : > { %v1239_v39 = vadd.f32 %v1238_v38, %v1159_v37  ;;  %v1240_v43 = vpop.f32.mrb[7].mxu0 }
 0x491   : > { %v1241_v44 = vadd.f32 %v1240_v43, %v1159_v37 }
 0x492   : > { %v1249_v53 = vmax.f32 %v1239_v39, 0.0 }
 0x493   : > { %v1250_v63 = vmax.f32 %v1241_v44, 0.0  ;;  %v1244_v48 = vpop.f32.mrb[8].mxu0 }
 0x494   : > { %v3192_v49 = vadd.f32 %v1249_v53, %v750_v47  ;;  %v1245_v22 = vadd.f32 %v1244_v48, %v1164_v62  ;;  %v1246_v41 = vpop.f32.mrb[9].mxu0 }
 0x495   : > { %v3194_v23 = vadd.f32 %v1250_v63, %v751_v58  ;;  %v1247_v50 = vadd.f32 %v1246_v41, %v1164_v62 }
 0x496   : > { %v1251_v54 = vmax.f32 %v1245_v22, 0.0 }
 0x497   : > { %v1252_v1 = vmax.f32 %v1247_v50, 0.0 }
 0x498   : > { %v3196_v3 = vadd.f32 %v1251_v54, %v752_v51 }
 0x499   : > { %v3198_v24 = vadd.f32 %v1252_v1, %v753_v0 }
 0x49a   : > { %v2159_v25 = vpack.i.bf16 %v3196_v3, %v3192_v49  ;;  %v1881_v42 = vpack.c.bf16 %v3196_v3, %v3192_v49 }
 0x49b   : > { %v2179_v6 = vpack.i.bf16 %v3198_v24, %v3194_v23  ;;  %v1879_v7 = vpack.c.bf16 %v3198_v24, %v3194_v23 }
 0x49c   : > { %2160 = vrot.lane.b32.xlu1 %v2159_v25, %s2448_s19 }
 0x49d   : > { %2180 = vrot.lane.b32.xlu0 %v2179_v6, %s2448_s19 }
 0x4a0   : > { %2165 = vrot.lane.b32.xlu1 %v2159_v25, %s2449_s26 }
 0x4a1   : > { %2185 = vrot.lane.b32.xlu0 %v2179_v6, %s2449_s26 }
 0x4a4   : > { %2170 = vrot.lane.b32.xlu1 %v2159_v25, %s2450_s30 }
 0x4a5   : > { %2190 = vrot.lane.b32.xlu0 %v2179_v6, %s2450_s30 }
 0x4a8   : > { %2175 = vrot.lane.b32.xlu1 %v2159_v25, %s2451_s10 }
 0x4a9   : > { %2195 = vrot.lane.b32.xlu0 %v2179_v6, %s2451_s10  ;;  %s3525_s10 = sld [smem:[#allocation22_spill]] }
 0x4ac   : > { %2200 = vrot.lane.b32.xlu1 %v2159_v25, %s2452_s21 }
 0x4ad   : > { %2220 = vrot.lane.b32.xlu0 %v2179_v6, %s2452_s21 }
 0x4af   : > { %v1389_v61 = vld [vmem:[%s3525_s10] sm:$0xff]  ;;  %v1390_v14 = vld [vmem:[%s3525_s10 + $0x8] sm:$0xff] }
 0x4b0   : > { %2205 = vrot.lane.b32.xlu1 %v2159_v25, %s2453_s11 }
 0x4b1   : > { %2225 = vrot.lane.b32.xlu0 %v2179_v6, %s2453_s11  ;;  %s467_s11 = scalar_lea.vmem [#allocation11], %s1640_s22 }
 0x4b4   : > { %2210 = vrot.lane.b32.xlu1 %v2159_v25, %s2454_s18 }
 0x4b5   : > { %2230 = vrot.lane.b32.xlu0 %v2179_v6, %s2454_s18  ;;  %s1506_s18 = sshll.u32 %s467_s11, 4  ;;  %s3333_s18 = int_to_ptr.vmem [resolvable:$true] %s1506_s18 }
 0x4b6   : > { %s2359_s24 = scalar_lea.vmem %s3333_s18, 512  ;;  %p2366_p6 = scmp.lt.s32.totalorder %s3333_s18, %s2364_s12 }
 0x4b7   : > { %p2360_p9 = scmp.ne.s32.totalorder %s3333_s18, %s2359_s24  ;;  %p2367_p11 = scmp.lt.s32.totalorder %s2365_s13, %s2359_s24 }
 0x4b8   : > { %2215 = vrot.lane.b32.xlu1 %v2159_v25, %s2455_s29 }
 0x4b9   : > { %2235 = vrot.lane.b32.xlu0 %v2179_v6, %s2455_s29  ;;  %s3560_s29 = sld [smem:[#allocation19_spill]]  ;;  %p2368_p12 = por %p2367_p11, %p2366_p6 }
 0x4bc   : > { %1393 = vperm.xlu1 %2078, %v1389_v61  }
 0x4bd   : > { %1398 = vperm.xlu0 %1997, %v1390_v14  }
 0x4bf   : > { %p3562_p10 = scmp.ne.s32.totalorder %s3560_s29, 0 }
 0x4c1   : > { %p2361_p1 = pnand %p2360_p9, %p3562_p10 }
 0x4c3   : > { %p2362_p2 = pneg %p2361_p1 }
 0x4c5   : > { %p2369_p3 = pnand %p2368_p12, %p2362_p2 }
 0x50e   : > { %v2161_v45 = vpop.permute.xlu1 %2160 }
 0x50f   : > { %v2163_v46 = vunpack.i.h.bf16 %v2161_v45  ;;  %v2162_v8 = vunpack.i.l.bf16 %v2161_v45  ;;  %v2181_v10 = vpop.permute.xlu0 %2180 }
 0x510   : > { %v2183_v11 = vunpack.i.h.bf16 %v2181_v10  ;;  %v2182_v13 = vunpack.i.l.bf16 %v2181_v10 }
 0x512   : > { %v1269_v15 = vsel %vm3526_vm7, %v2162_v8, %v2182_v13  ;;  %v1270_v16 = vsel %vm3527_vm0, %v2163_v46, %v2183_v11  ;;  %v1271_v17 = vsel %vm3528_vm2, %v2182_v13, %v2162_v8  ;;  %v1272_v20 = vsel %vm3529_vm1, %v2183_v11, %v2163_v46  ;;  %v2166_v21 = vpop.permute.xlu1 %2165  ;;  %vm3531_vm7 = vmmov %vm3530_vm9 }
 0x513   : > { %v1856_v26 = vpack.c.bf16 %v1270_v16, %v1269_v15  ;;  %v1859_v28 = vpack.c.bf16 %v1272_v20, %v1271_v17  ;;  %v2168_v29 = vunpack.i.h.bf16 %v2166_v21  ;;  %v2167_v30 = vunpack.i.l.bf16 %v2166_v21  ;;  %v2186_v2 = vpop.permute.xlu0 %2185  ;;  %vm3532_vm0 = vmmov %vm3531_vm7 }
 0x514   : > { %v2188_v32 = vunpack.i.h.bf16 %v2186_v2  ;;  %v2187_v33 = vunpack.i.l.bf16 %v2186_v2  ;;  %vm3533_vm2 = vmmov %vm3532_vm0  ;;  %vm3534_vm1 = vcmp.lt.s32.totalorder %v2789_v59, 15 }
 0x515   : > { %1858 = vmatprep.subr.msk.bf16.mxu1 %vm2820_vm11, %v1856_v26 }
 0x516   : > { %v1287_v56 = vsel %vm3530_vm9, %v2187_v33, %v2167_v30  ;;  %v1288_v36 = vsel %vm3531_vm7, %v2188_v32, %v2168_v29  ;;  %v2171_v37 = vpop.permute.xlu1 %2170  ;;  %1861 = vmatpush1.bf16.msk.msra.mxu1 %vm2831_vm12, %v1859_v28  ;;  %v1285_v38 = vsel %vm3532_vm0, %v2167_v30, %v2187_v33  ;;  %v1286_v39 = vsel %vm3533_vm2, %v2168_v29, %v2188_v32  ;;  %vm3535_vm9 = vmmov %vm3534_vm1 }
 0x517   : > { %v1864_v43 = vpack.c.bf16 %v1288_v36, %v1287_v56  ;;  %v2173_v44 = vunpack.i.h.bf16 %v2171_v37  ;;  %v2172_v47 = vunpack.i.l.bf16 %v2171_v37  ;;  %v2191_v52 = vpop.permute.xlu0 %2190  ;;  %v1862_v53 = vpack.c.bf16 %v1286_v39, %v1285_v38  ;;  %vm3536_vm12 = vmmov %vm3534_vm1 }
 0x518   : > { %v2193_v58 = vunpack.i.h.bf16 %v2191_v52  ;;  %v2192_v60 = vunpack.i.l.bf16 %v2191_v52  ;;  %vm3537_vm7 = vmmov %vm3534_vm1  ;;  %vm3538_vm0 = vcmp.lt.s32.totalorder %v2789_v59, 1 }
 0x519   : > { %1863 = vmatprep.subr.bf16.mxu1 %v1862_v53  ;;  %vm3539_vm2 = vmmov %vm3538_vm0 }
 0x51a   : > { %v1301_v62 = vsel %vm3534_vm1, %v2172_v47, %v2192_v60  ;;  %v1302_v31 = vsel %vm3535_vm9, %v2173_v44, %v2193_v58  ;;  %v1303_v63 = vsel %vm3536_vm12, %v2192_v60, %v2172_v47  ;;  %v1304_v48 = vsel %vm3537_vm7, %v2193_v58, %v2173_v44  ;;  %v2176_v22 = vpop.permute.xlu1 %2175  ;;  %1866 = vmatpush1.bf16.msk.msra.mxu1 %vm2851_vm3, %v1864_v43  ;;  %vm3540_vm1 = vmmov %vm3538_vm0 }
 0x51b   : > { %v1867_v41 = vpack.c.bf16 %v1302_v31, %v1301_v62  ;;  %v1870_v50 = vpack.c.bf16 %v1304_v48, %v1303_v63  ;;  %v2178_v51 = vunpack.i.h.bf16 %v2176_v22  ;;  %v2177_v54 = vunpack.i.l.bf16 %v2176_v22  ;;  %v2196_v0 = vpop.permute.xlu0 %2195  ;;  %vm3541_vm3 = vmmov %vm3538_vm0 }
 0x51c   : > { %v2198_v1 = vunpack.i.h.bf16 %v2196_v0  ;;  %v2197_v25 = vunpack.i.l.bf16 %v2196_v0  ;;  %vm3546_vm12 = vcmp.lt.s32.totalorder %v2789_v59, 113 }
 0x51d   : > { %1869 = vmatprep.subr.msk.bf16.mxu1 %vm2883_vm13, %v1867_v41  ;;  %vm3542_vm13 = vcmp.lt.s32.totalorder %v2789_v59, 127 }
 0x51e   : > { %v1317_v6 = vsel %vm3538_vm0, %v2177_v54, %v2197_v25  ;;  %v1318_v4 = vsel %vm3539_vm2, %v2178_v51, %v2198_v1  ;;  %v1319_v40 = vsel %vm3540_vm1, %v2197_v25, %v2177_v54  ;;  %v1320_v61 = vsel %vm3541_vm3, %v2198_v1, %v2178_v51  ;;  %v2201_v14 = vpop.permute.xlu1 %2200  ;;  %1872 = vmatpush1.bf16.msk.msra.mxu1 %vm2890_vm14, %v1870_v50  ;;  %vm3543_vm9 = vmmov %vm3542_vm13  ;;  %v1259_v51 = vld [vmem:[#allocation9 + $0x10] sm:$0xff] }
 0x51f   : > { %v1873_v45 = vpack.c.bf16 %v1318_v4, %v1317_v6  ;;  %v1876_v46 = vpack.c.bf16 %v1320_v61, %v1319_v40  ;;  %v2203_v5 = vunpack.i.h.bf16 %v2201_v14  ;;  %v2202_v8 = vunpack.i.l.bf16 %v2201_v14  ;;  %v2221_v10 = vpop.permute.xlu0 %2220  ;;  %vm3545_vm14 = vmmov %vm3543_vm9 }
 0x520   : > { %v2223_v11 = vunpack.i.h.bf16 %v2221_v10  ;;  %v2222_v13 = vunpack.i.l.bf16 %v2221_v10  ;;  %vm3550_vm2 = vcmp.lt.s32.totalorder %v2789_v59, 112 }
 0x521   : > { %1875 = vmatprep.subr.msk.bf16.mxu1 %vm2820_vm11, %v1873_v45  ;;  %vm3544_vm11 = vmmov %vm3543_vm9 }
 0x522   : > { %v1335_v15 = vsel %vm3542_vm13, %v2222_v13, %v2202_v8  ;;  %v1336_v16 = vsel %vm3543_vm9, %v2223_v11, %v2203_v5  ;;  %v2206_v17 = vpop.permute.xlu1 %2205  ;;  %1878 = vmatpush1.bf16.msk.msra.mxu1 %vm3506_vm5, %v1876_v46  ;;  %v1333_v28 = vsel %vm3544_vm11, %v2202_v8, %v2222_v13  ;;  %v1334_v29 = vsel %vm3545_vm14, %v2203_v5, %v2223_v11  ;;  %vm3547_vm5 = vmmov %vm3546_vm12 }
 0x523   : > { %v2208_v12 = vunpack.i.h.bf16 %v2206_v17  ;;  %v2207_v20 = vunpack.i.l.bf16 %v2206_v17  ;;  %v2226_v21 = vpop.permute.xlu0 %2225  ;;  %1880 = vmatprep.subr.bf16.mxu1 %v1879_v7  ;;  %v1883_v30 = vpack.c.bf16 %v1336_v16, %v1335_v15  ;;  %v1886_v33 = vpack.c.bf16 %v1334_v29, %v1333_v28  ;;  %vm3548_vm7 = vmmov %vm3547_vm5 }
 0x524   : > { %v2228_v26 = vunpack.i.h.bf16 %v2226_v21  ;;  %v2227_v19 = vunpack.i.l.bf16 %v2226_v21  ;;  %vm3549_vm0 = vmmov %vm3547_vm5  ;;  %vm3555_vm9 = vcmp.lt.s32.totalorder %v2789_v59, 111 }
 0x525   : > { %vm3551_vm1 = vmmov %vm3550_vm2 }
 0x526   : > { %v1351_v34 = vsel %vm3546_vm12, %v2227_v19, %v2207_v20  ;;  %v1352_v2 = vsel %vm3547_vm5, %v2228_v26, %v2208_v12  ;;  %v2211_v32 = vpop.permute.xlu1 %2210  ;;  %1882 = vmatpush1.bf16.msra.mxu1 %v1881_v42  ;;  %v1349_v37 = vsel %vm3548_vm7, %v2207_v20, %v2227_v19  ;;  %v1350_v38 = vsel %vm3549_vm0, %v2208_v12, %v2228_v26  ;;  %vm3553_vm3 = vmmov %vm3551_vm1 }
 0x527   : > { %v2213_v23 = vunpack.i.h.bf16 %v2211_v32  ;;  %v2212_v24 = vunpack.i.l.bf16 %v2211_v32  ;;  %v2231_v7 = vpop.permute.xlu0 %2230  ;;  %1885 = vmatprep.subr.msk.bf16.mxu1 %vm3511_vm4, %v1883_v30  ;;  %v1889_v39 = vpack.c.bf16 %v1352_v2, %v1351_v34  ;;  %vm3552_vm4 = vnez %v3473_v55  ;;  %vm3554_vm13 = vmmov %vm3551_vm1 }
 0x528   : > { %v2233_v56 = vunpack.i.h.bf16 %v2231_v7  ;;  %v2232_v36 = vunpack.i.l.bf16 %v2231_v7  ;;  %v1892_v47 = vpack.c.bf16 %v1350_v38, %v1349_v37  ;;  %vm3556_vm11 = vmmov %vm3555_vm9 }
 0x529   : > { %vm3557_vm14 = vmmov %vm3555_vm9 }
 0x52a   : > { %v1367_v49 = vsel %vm3550_vm2, %v2232_v36, %v2212_v24  ;;  %v1368_v3 = vsel %vm3551_vm1, %v2233_v56, %v2213_v23  ;;  %v2216_v42 = vpop.permute.xlu1 %2215  ;;  %1888 = vmatpush1.bf16.msk.msra.mxu1 %vm2963_vm6, %v1886_v33  ;;  %v1365_v58 = vsel %vm3553_vm3, %v2212_v24, %v2232_v36  ;;  %v1366_v60 = vsel %vm3554_vm13, %v2213_v23, %v2233_v56  ;;  %vm3558_vm12 = vmmov %vm3555_vm9 }
 0x52b   : > { %v2218_v57 = vunpack.i.h.bf16 %v2216_v42  ;;  %v2217_v43 = vunpack.i.l.bf16 %v2216_v42  ;;  %v2236_v44 = vpop.permute.xlu0 %2235  ;;  %1891 = vmatprep.subr.msk.bf16.mxu1 %vm3552_vm4, %v1889_v39  ;;  %v1895_v62 = vpack.c.bf16 %v1368_v3, %v1367_v49  ;;  %v1898_v55 = vpack.c.bf16 %v1366_v60, %v1365_v58 }
 0x52c   : > { %v2238_v52 = vunpack.i.h.bf16 %v2236_v44  ;;  %v2237_v53 = vunpack.i.l.bf16 %v2236_v44 }
 0x52e   : > { %v1383_v31 = vsel %vm3555_vm9, %v2237_v53, %v2217_v43  ;;  %v1384_v63 = vsel %vm3556_vm11, %v2238_v52, %v2218_v57  ;;  %1894 = vmatpush1.bf16.msk.msra.mxu1 %vm2993_vm10, %v1892_v47  ;;  %v1381_v48 = vsel %vm3557_vm14, %v2217_v43, %v2237_v53  ;;  %v1382_v22 = vsel %vm3558_vm12, %v2218_v57, %v2238_v52 }
 0x52f   : > { %1897 = vmatprep.subr.msk.bf16.mxu1 %vm2997_vm8, %v1895_v62  ;;  %v1900_v41 = vpack.c.bf16 %v1384_v63, %v1383_v31  ;;  %v1903_v50 = vpack.c.bf16 %v1382_v22, %v1381_v48  ;;  %vm3559_vm10 = vcmask 130048  }
 0x532   : > { %1899 = vmatpush1.bf16.msra.mxu1 %v1898_v55 }
 0x533   : > { %1902 = vmatprep.subr.msk.bf16.mxu1 %vm3015_vm15, %v1900_v41 }
 0x536   : > { %1905 = vmatpush1.bf16.msk.msra.mxu1 %vm2963_vm6, %v1903_v50 }
 0x539   : > { %1472 = vmatmul.mubr.f32.vlgmr.msra.gmra.mrb[4].mxu1 %v1257_v18 }
 0x53a   : > { %1739 = vmatprep.mubr.msk.f32.mxu1 %vm3559_vm10, %v1260_v27 }
 0x53b   : > { %v1394_v59 = vpop.permute.xlu1 %1393 }
 0x53c   : > { %v1399_v9 = vpop.permute.xlu0 %1398 }
 0x53d   : > { %1478 = vmatmul.mubr.f32.gmra.mrb[6].mxu1 %v1259_v51 }
 0x60c   : > { %v1473_v54 = vpop.f32.mrb[4].mxu1 }
 0x60d   : > { %v1474_v0 = vadd.f32 %v1473_v54, %v1394_v59  ;;  %v1475_v1 = vpop.f32.mrb[5].mxu1 }
 0x60e   : > { %v1476_v25 = vadd.f32 %v1475_v1, %v1394_v59 }
 0x60f   : > { %v1484_v35 = vmax.f32 %v1474_v0, 0.0 }
 0x610   : > { %v1485_v6 = vmax.f32 %v1476_v25, 0.0  ;;  %v1479_v4 = vpop.f32.mrb[6].mxu1 }
 0x611   : > { %1488 = vst [vmem:[%s467_s11] sm:$0xff] %v1484_v35  ;;  %v1480_v40 = vadd.f32 %v1479_v4, %v1399_v9  ;;  %v1481_v61 = vpop.f32.mrb[7].mxu1 }
 0x612   : > { %1489 = vst [vmem:[%s467_s11 + $0x8] sm:$0xff] %v1485_v6  ;;  %v1482_v14 = vadd.f32 %v1481_v61, %v1399_v9 }
 0x613   : > { %v1486_v45 = vmax.f32 %v1480_v40, 0.0 }
 0x614   : > { %v1487_v46 = vmax.f32 %v1482_v14, 0.0 }
 0x615   : > { %1490 = vst [vmem:[%s467_s11 + $0x10] sm:$0xff] %v1486_v45 }
 0x616   : > { %1491 = vst [vmem:[%s467_s11 + $0x18] sm:$0xff] %v1487_v46 }
 0x617   : > { %2372 = shalt.err (!%p2369_p3)
}
 0x618   : > { %s2373_s19 = scalar_lea.hbm %s3338_s27, 512  ;;  %s2377_s25 = scalar_lea.hbm %s3561_s9, 1024 }
 0x619   : > { %p2374_p5 = scmp.ne.s32.totalorder %s3338_s27, %s2373_s19  ;;  %p2378_p7 = scmp.lt.u32.totalorder %s3338_s27, %s3561_s9 }
 0x61a   : > { %p2379_p8 = scmp.lt.u32.totalorder %s2377_s25, %s2373_s19  ;;  %p2381_p1 = scmp.lt.u32.totalorder %s2373_s19, %s3338_s27 }
 0x61b   : > { %p2375_p13 = pnand %p2374_p5, %p3562_p10 }
 0x61c   : > { %p2380_p9 = por %p2379_p8, %p2378_p7 }
 0x61d   : > { %p2376_p0 = pneg %p2375_p13 }
 0x61e   : > { %p2382_p2 = por %p2381_p1, %p2380_p9 }
 0x620   : > { %p2383_p6 = pnand %p2382_p2, %p2376_p0 }
 0x622   : > { %2386 = shalt.err (!%p2383_p6)
}
 0x623   : > { %s2457_s20 = smov 256   ;;  %s2458_s22 = smov 512  }
 0x624   : > { %1920 = dma.vmem_to_hbm [thread:$0]  (%p3562_p10), %s3333_s18, 512, %s3338_s27, %s1493_s17, %s2457_s20, %s2458_s22, %s2449_s26  }
 0x625 PF: > { %s3563_s24 = sld [smem:[#allocation16_spill]]  ;;  %s3564_s28 = sld [smem:[#allocation20_spill]] }
 0x62b   : > { %s1521_s12 = sand.u32 1, %s3563_s24   ;;  %p3565_p11 = scmp.ne.s32.totalorder %s3564_s28, 0 }
 0x62c   : > { %s1522_s13 = scalar_lea.sflag [#allocation4], %s1521_s12 }
 0x62d   : > { %p1933_p12 = pnand %p1631_p4, %p3565_p11 }
 0x62f   : > { %2416 = dma.done.wait (!%p1933_p12), %s1522_s13, 512  }
 0x630   : > { %2418 = vsyncadd (!%p1933_p12), %s1522_s13, 4294966784  ;;  %s3566_s16 = sld [smem:[#allocation17_spill]]  ;;  %s3567_s19 = sld [smem:[#allocation18_spill]] }
 0x631   : > { %s3568_s13 = smov %s2425_s14  ;;  %s3569_s14 = smov %s2429_s15 }
 0x636   : > { %p25_p3 = scmp.ge.s32.totalorder %s3566_s16, 4   ;;  %s3570_s15 = smov %s3567_s19 }
 0x638   :  { %27 = sbr.rel (!%p25_p3) target bundleno = 11 (0xb), region = 148 }
 0x63f   :  { %1527 = vsyncpa [#allocation3], 1 }
 0x640   :  { %1529 = vsyncpa [#allocation3 + $0x1], 1 }
 0x641   :  { %1530 = vsyncpa [#allocation7], 1 }
 0x642   :  { %1531 = vsyncpa [#allocation10], 1 }
 0x643   :  { %1532 = vsyncpa [#allocation4], 1 }
 0x644   :  { %1534 = vsyncpa [#allocation4 + $0x1], 1 }

</bundles_post_ra>
